<compile_context>
chip_gen: v6e
topology: v6e:2x2x1
jax: 0.10.0
libtpu: 0.0.40
codegen_flags: <defaults>
</compile_context>

<pallas_src>
import functools

import jax
import jax.numpy as jnp
from jax.experimental import pallas as pl
from jax.experimental.pallas import tpu as pltpu


def _dec_block_kernel(x_ref, w_ref, b_ref, o_ref, *, tap_offsets, cin, rows):
    """Fused stride-phase ConvTranspose2d + bias + SiLU for one batch tile.

    x_ref : (Bt, Lf, Cin)       f32, flattened halo-padded image rows (+ guard rows)
    w_ref : (T*T*Cin, Nc_pad)   bf16, tap-stacked, phase-combined, lane-padded weight
    b_ref : (1, Nc_pad)         f32, phase-tiled (zero-padded) bias
    o_ref : (Bt, rows, Nc_pad)  bf16, flat per-phase output (dense 128-lane stores)
    """
    n_bt = o_ref.shape[0]
    for bt in range(n_bt):                       # static unroll over the batch tile
        acc = None
        for i, off in enumerate(tap_offsets):    # static unroll over T*T taps
            # Contiguous row-slice of the flattened image == shifted tap window.
            lhs = x_ref[bt, off:off + rows, :].astype(jnp.bfloat16)
            w_tap = w_ref[i * cin:(i + 1) * cin, :]
            p = jnp.dot(lhs, w_tap, preferred_element_type=jnp.float32)
            acc = p if acc is None else acc + p
        acc = acc + b_ref[...]                   # bias in f32
        y = acc * jax.nn.sigmoid(acc)            # SiLU in f32 (sigmoid -> EUP slot)
        o_ref[bt] = y.astype(o_ref.dtype)        # one dense lane-wide output slab


def dec_block_forward(x_nchw, weight, bias, *, stride, batch_tile=1):
    """x_nchw: (B, Cin, H, W); weight: (Cin, Cout, KH, KW) [PyTorch layout];
    bias: (Cout,).  Returns (B, Cout, OH, OW) like the PyTorch module (f32)."""
    B, Cin, H, W = x_nchw.shape
    w_cin, Cout, KH, KW = weight.shape
    assert w_cin == Cin and KH == KW
    assert B % batch_tile == 0
    K, s = KH, stride
    OH = (H - 1) * s + K
    OW = (W - 1) * s + K

    mmax = -(-K // s) - 1            # ceil(K/s) - 1 : halo per side / max tap shift
    T = mmax + 1                     # taps per spatial axis
    Q = H + mmax                     # per-phase output rows (pre-crop)
    Qw = W + mmax                    # valid per-phase output cols (pre-crop)
    Hp, Wp = H + 2 * mmax, W + 2 * mmax
    Nc = s * s * Cout                # all stride^2 phases stacked on the lane axis
    Ncp = ((Nc + 127) // 128) * 128  # lane-dense padded channel count
    Kc = T * T * Cin                 # total contraction size across taps
    R = Q * Wp                       # flat per-phase rows (Wp-Qw junk cols per row)
    Lf = Hp * Wp + mmax              # flattened input rows incl. tap guard rows

    # NHWC, halo pad, flatten (H, W) -> rows so every tap is a contiguous slice.
    x = jnp.transpose(x_nchw, (0, 2, 3, 1)).astype(jnp.float32)
    xp = jnp.pad(x, ((0, 0), (mmax, mmax), (mmax, mmax), (0, 0)))
    xpf = jnp.pad(xp.reshape(B, Hp * Wp, Cin), ((0, 0), (0, mmax), (0, 0)))

    # Phase-combined weight: tap shift a corresponds to kernel index k = p + s*(mmax-a);
    # (tap, phase) pairs that fall outside the kernel get zero blocks.
    tap_rows = []
    for a_h in range(T):
        for a_w in range(T):
            blocks = []
            for ph in range(s):
                for pw in range(s):
                    kh = ph + s * (mmax - a_h)
                    kw = pw + s * (mmax - a_w)
                    if 0 <= kh < K and 0 <= kw < K:
                        blocks.append(weight[:, :, kh, kw])           # (Cin, Cout)
                    else:
                        blocks.append(jnp.zeros((Cin, Cout), weight.dtype))
            tap_rows.append(jnp.concatenate(blocks, axis=1))          # (Cin, Nc)
    wcomb = jnp.concatenate(tap_rows, axis=0)                         # (Kc, Nc)
    wcomb = jnp.pad(wcomb, ((0, 0), (0, Ncp - Nc))).astype(jnp.bfloat16)
    bcomb = jnp.pad(jnp.tile(bias, s * s), (0, Ncp - Nc))
    bcomb = bcomb.reshape(1, Ncp).astype(jnp.float32)

    tap_offsets = tuple(a * Wp + b for a in range(T) for b in range(T))
    kernel = functools.partial(_dec_block_kernel, tap_offsets=tap_offsets,
                               cin=Cin, rows=R)

    Bt = batch_tile
    # Right-sized scoped VMEM: double-buffered pipeline blocks + f32 acc headroom.
    blk_bytes = (Bt * Lf * Cin * 4 + Kc * Ncp * 2 + Ncp * 4 + Bt * R * Ncp * 2)
    acc_bytes = Bt * R * Ncp * 4
    vmem_limit = 2 * blk_bytes + 8 * acc_bytes
    vmem_limit = max(((vmem_limit + (1 << 20) - 1) >> 20) << 20, 2 << 20)

    flops = 2 * B * R * Kc * Ncp
    bytes_accessed = (B * Lf * Cin * 4 + Kc * Ncp * 2 + Ncp * 4 + B * R * Ncp * 2)

    out = pl.pallas_call(
        kernel,
        out_shape=jax.ShapeDtypeStruct((B, R, Ncp), jnp.bfloat16),
        grid=(B // Bt,),
        in_specs=[
            pl.BlockSpec((Bt, Lf, Cin), lambda g: (g, 0, 0)),
            pl.BlockSpec((Kc, Ncp), lambda g: (0, 0)),
            pl.BlockSpec((1, Ncp), lambda g: (0, 0)),
        ],
        out_specs=pl.BlockSpec((Bt, R, Ncp), lambda g: (g, 0, 0)),
        compiler_params=pltpu.CompilerParams(
            dimension_semantics=("parallel",),
            vmem_limit_bytes=int(vmem_limit)),
        cost_estimate=pl.CostEstimate(
            flops=flops,
            transcendentals=B * R * Ncp,
            bytes_accessed=bytes_accessed),
    )(xpf, wcomb, bcomb)

    # Drop junk columns + padded channels, pixel-shuffle the s^2 phases, crop, NCHW.
    y = out.reshape(B, Q, Wp, Ncp)[:, :, :Qw, :Nc].astype(jnp.float32)
    y = y.reshape(B, Q, Qw, s, s, Cout)
    y = jnp.transpose(y, (0, 1, 3, 2, 4, 5)).reshape(B, s * Q, s * Qw, Cout)
    y = y[:, :OH, :OW, :]
    return jnp.transpose(y, (0, 3, 1, 2))                             # NCHW


def dec_block_reference(x_nchw, weight, bias, *, stride):
    """Pure-JAX f32 reference using the scatter form of ConvTranspose2d + SiLU."""
    B, Cin, H, W = x_nchw.shape
    _, Cout, KH, KW = weight.shape
    OH = (H - 1) * stride + KH
    OW = (W - 1) * stride + KW
    x = jnp.transpose(x_nchw, (0, 2, 3, 1)).astype(jnp.float32)
    out = jnp.zeros((B, OH, OW, Cout), jnp.float32)
    for kh in range(KH):
        for kw in range(KW):
            contrib = jnp.einsum('bhwc,cd->bhwd', x, weight[:, :, kh, kw])
            out = out.at[:,
                         kh:kh + stride * (H - 1) + 1:stride,
                         kw:kw + stride * (W - 1) + 1:stride, :].add(contrib)
    out = out + bias[None, None, None, :]
    out = out * jax.nn.sigmoid(out)                                   # SiLU
    return jnp.transpose(out, (0, 3, 1, 2))


if __name__ == "__main__":
    # Shapes consistent with the module: in_dim=4, out_dim=8, kernel=3, stride=2.
    B, Cin, H, W = 2, 4, 16, 16
    Cout, K, stride = 8, 3, 2

    key = jax.random.PRNGKey(0)
    kx, kw, kb = jax.random.split(key, 3)
    x = jax.random.normal(kx, (B, Cin, H, W), dtype=jnp.float32)
    weight = 0.1 * jax.random.normal(kw, (Cin, Cout, K, K), dtype=jnp.float32)
    bias = 0.1 * jax.random.normal(kb, (Cout,), dtype=jnp.float32)

    y = dec_block_forward(x, weight, bias, stride=stride, batch_tile=1)
    y = jax.block_until_ready(y)

    # Reference on the same bf16-rounded operands the kernel's MXU consumes; the
    # remaining delta is accumulation order + the final bf16 output rounding.
    x_bf = x.astype(jnp.bfloat16).astype(jnp.float32)
    w_bf = weight.astype(jnp.bfloat16).astype(jnp.float32)
    y_ref = dec_block_reference(x_bf, w_bf, bias, stride=stride)

    assert y.shape == (B, Cout, (H - 1) * stride + K, (W - 1) * stride + K)
    assert jnp.allclose(y, y_ref, atol=2e-2, rtol=2e-2), "mismatch vs reference"

    # TODO(synk): optional branches (Upsample/bilinear, BatchNorm2d, skip_connection)
    # are off in the default constructor; only ConvTranspose2d + SiLU is implemented.
    print("KERNEL_OK")
</pallas_src>

<mosaic_0001>
module attributes {stable_mosaic.version = 11 : i64} {
  func.func @_dec_block_kernel(%arg0: i32, %arg1: memref<1x325x4xf32, #tpu.memory_space<vmem>>, %arg2: memref<16x128xbf16, #tpu.memory_space<vmem>>, %arg3: memref<1x128xf32, #tpu.memory_space<vmem>>, %arg4: memref<1x306x128xbf16, #tpu.memory_space<vmem>>) attributes {dimension_semantics = [#tpu.dimension_semantics<parallel>], iteration_bounds = array<i64: 2>, scalar_prefetch = 0 : i64, scratch_operands = 0 : i64, tpu.core_type = #tpu.core_type<tc>, window_params = [{transform_indices = @transform_0, window_bounds = array<i64: 1, 325, 4>}, {pipeline_mode = #tpu.pipeline_mode<synchronous>, transform_indices = @transform_1, window_bounds = array<i64: 16, 128>}, {pipeline_mode = #tpu.pipeline_mode<synchronous>, transform_indices = @transform_2, window_bounds = array<i64: 1, 128>}, {transform_indices = @transform_3, window_bounds = array<i64: 1, 306, 128>}]} {
    %c0 = arith.constant 0 : index
    %c0_0 = arith.constant 0 : index
    %c0_1 = arith.constant 0 : index
    %0 = vector.load %arg1[%c0, %c0_0, %c0_1] : memref<1x325x4xf32, #tpu.memory_space<vmem>>, vector<1x306x4xf32>
    %1 = vector.shape_cast %0 : vector<1x306x4xf32> to vector<306x4xf32>
    %2 = arith.truncf %1 : vector<306x4xf32> to vector<306x4xbf16>
    %c0_2 = arith.constant 0 : index
    %c0_3 = arith.constant 0 : index
    %3 = vector.load %arg2[%c0_2, %c0_3] : memref<16x128xbf16, #tpu.memory_space<vmem>>, vector<4x128xbf16>
    %cst = arith.constant dense<0.000000e+00> : vector<306x128xf32>
    %4 = tpu.matmul %2, %3, %cst {dimension_numbers = #tpu.dot_dimension_numbers<[1], [0], [0], [1], [0, 0, 1, 1], [], []>} : vector<306x4xbf16>, vector<4x128xbf16>, vector<306x128xf32> -> vector<306x128xf32>
    %c0_4 = arith.constant 0 : index
    %c1 = arith.constant 1 : index
    %c0_5 = arith.constant 0 : index
    %5 = vector.load %arg1[%c0_4, %c1, %c0_5] : memref<1x325x4xf32, #tpu.memory_space<vmem>>, vector<1x306x4xf32>
    %6 = vector.shape_cast %5 : vector<1x306x4xf32> to vector<306x4xf32>
    %7 = arith.truncf %6 : vector<306x4xf32> to vector<306x4xbf16>
    %c4 = arith.constant 4 : index
    %c0_6 = arith.constant 0 : index
    %8 = vector.load %arg2[%c4, %c0_6] : memref<16x128xbf16, #tpu.memory_space<vmem>>, vector<4x128xbf16>
    %cst_7 = arith.constant dense<0.000000e+00> : vector<306x128xf32>
    %9 = tpu.matmul %7, %8, %cst_7 {dimension_numbers = #tpu.dot_dimension_numbers<[1], [0], [0], [1], [0, 0, 1, 1], [], []>} : vector<306x4xbf16>, vector<4x128xbf16>, vector<306x128xf32> -> vector<306x128xf32>
    %10 = arith.addf %4, %9 : vector<306x128xf32>
    %c0_8 = arith.constant 0 : index
    %c18 = arith.constant 18 : index
    %c0_9 = arith.constant 0 : index
    %11 = vector.load %arg1[%c0_8, %c18, %c0_9] : memref<1x325x4xf32, #tpu.memory_space<vmem>>, vector<1x306x4xf32>
    %12 = vector.shape_cast %11 : vector<1x306x4xf32> to vector<306x4xf32>
    %13 = arith.truncf %12 : vector<306x4xf32> to vector<306x4xbf16>
    %c8 = arith.constant 8 : index
    %c0_10 = arith.constant 0 : index
    %14 = vector.load %arg2[%c8, %c0_10] : memref<16x128xbf16, #tpu.memory_space<vmem>>, vector<4x128xbf16>
    %cst_11 = arith.constant dense<0.000000e+00> : vector<306x128xf32>
    %15 = tpu.matmul %13, %14, %cst_11 {dimension_numbers = #tpu.dot_dimension_numbers<[1], [0], [0], [1], [0, 0, 1, 1], [], []>} : vector<306x4xbf16>, vector<4x128xbf16>, vector<306x128xf32> -> vector<306x128xf32>
    %16 = arith.addf %10, %15 : vector<306x128xf32>
    %c0_12 = arith.constant 0 : index
    %c19 = arith.constant 19 : index
    %c0_13 = arith.constant 0 : index
    %17 = vector.load %arg1[%c0_12, %c19, %c0_13] : memref<1x325x4xf32, #tpu.memory_space<vmem>>, vector<1x306x4xf32>
    %18 = vector.shape_cast %17 : vector<1x306x4xf32> to vector<306x4xf32>
    %19 = arith.truncf %18 : vector<306x4xf32> to vector<306x4xbf16>
    %c12 = arith.constant 12 : index
    %c0_14 = arith.constant 0 : index
    %20 = vector.load %arg2[%c12, %c0_14] : memref<16x128xbf16, #tpu.memory_space<vmem>>, vector<4x128xbf16>
    %cst_15 = arith.constant dense<0.000000e+00> : vector<306x128xf32>
    %21 = tpu.matmul %19, %20, %cst_15 {dimension_numbers = #tpu.dot_dimension_numbers<[1], [0], [0], [1], [0, 0, 1, 1], [], []>} : vector<306x4xbf16>, vector<4x128xbf16>, vector<306x128xf32> -> vector<306x128xf32>
    %22 = arith.addf %16, %21 : vector<306x128xf32>
    %c0_16 = arith.constant 0 : index
    %c0_17 = arith.constant 0 : index
    %23 = vector.load %arg3[%c0_16, %c0_17] : memref<1x128xf32, #tpu.memory_space<vmem>>, vector<1x128xf32>
    %24 = vector.broadcast %23 : vector<1x128xf32> to vector<306x128xf32>
    %25 = arith.addf %22, %24 : vector<306x128xf32>
    %26 = arith.negf %25 : vector<306x128xf32>
    %27 = math.exp %26 : vector<306x128xf32>
    %cst_18 = arith.constant 1.000000e+00 : f32
    %28 = vector.broadcast %cst_18 : f32 to vector<306x128xf32>
    %29 = arith.addf %28, %27 : vector<306x128xf32>
    %30 = arith.divf %28, %29 : vector<306x128xf32>
    %31 = arith.mulf %25, %30 : vector<306x128xf32>
    %32 = arith.truncf %31 : vector<306x128xf32> to vector<306x128xbf16>
    %c0_19 = arith.constant 0 : index
    %c0_20 = arith.constant 0 : index
    %c0_21 = arith.constant 0 : index
    %33 = vector.load %arg4[%c0_19, %c0_20, %c0_21] : memref<1x306x128xbf16, #tpu.memory_space<vmem>>, vector<1x306x128xbf16>
    %34 = vector.shape_cast %33 : vector<1x306x128xbf16> to vector<306x128xbf16>
    %35 = vector.shape_cast %32 : vector<306x128xbf16> to vector<1x306x128xbf16>
    tpu.vector_store %arg4[%c0_19, %c0_20, %c0_21], %35 {strides = array<i32>} : memref<1x306x128xbf16, #tpu.memory_space<vmem>>, vector<1x306x128xbf16>,
    return
  }
  func.func @transform_0(%arg0: i32) -> (i32, i32, i32) {
    %c0_i32 = arith.constant 0 : i32
    %c0_i32_0 = arith.constant 0 : i32
    %c0_i32_1 = arith.constant 0 : i32
    return %arg0, %c0_i32, %c0_i32_0 : i32, i32, i32
  }
  func.func @transform_1(%arg0: i32) -> (i32, i32) {
    %c0_i32 = arith.constant 0 : i32
    %c0_i32_0 = arith.constant 0 : i32
    %c0_i32_1 = arith.constant 0 : i32
    return %c0_i32, %c0_i32_0 : i32, i32
  }
  func.func @transform_2(%arg0: i32) -> (i32, i32) {
    %c0_i32 = arith.constant 0 : i32
    %c0_i32_0 = arith.constant 0 : i32
    %c0_i32_1 = arith.constant 0 : i32
    return %c0_i32, %c0_i32_0 : i32, i32
  }
  func.func @transform_3(%arg0: i32) -> (i32, i32, i32) {
    %c0_i32 = arith.constant 0 : i32
    %c0_i32_0 = arith.constant 0 : i32
    %c0_i32_1 = arith.constant 0 : i32
    return %arg0, %c0_i32, %c0_i32_0 : i32, i32, i32
  }
}

</mosaic_0001>

<bundles_post_ra>
// kernel: tpu_custom_call.1
= control target key start
LH: loop header
LB: loop body
LE: loop exit
PB: predicated region body
PF: predicated region fallthrough
CT: control target
= control target key end

     0   :  { %s2864_s12 = smov 0   ;;  %s3482_s0 = inlined_call_operand.vmem [shape: f32[2,325,4], index: 0, kind: input, shape index: {}]   ;;  %s3483_s1 = inlined_call_operand.vmem [shape: bf16[16,128], index: 1, kind: input, shape index: {}]   ;;  %s3484_s2 = inlined_call_operand.vmem [shape: f32[1,128], index: 2, kind: input, shape index: {}]   ;;  %s3485_s3 = inlined_call_operand.vmem [shape: bf16[2,306,128], index: 3, kind: output, shape index: {}]  }
   0x1 LB: > { %s2090_s13 = sadd.s32 4294967295, %s2842_s12   ;;  %p2094_p0 = scmp.ge.s32.totalorder %s2842_s12, 1  ;;  %s2842_s12 = sphi %s2864_s12, %s13_s12  }
   0x2   : > { %p137_p1 = scmp.lt.s32.totalorder %s2842_s12, 3 }
   0x4   : > { %p138_p2 = pnand %p2094_p0, %p137_p1 }
   0x5   : > { %p161_p3 = scmp.lt.s32.totalorder (!%p138_p2), %s2090_s13, 1 }
   0x6   : > { %141 = sbr.rel (%p138_p2) target bundleno = 417 (0x1a1), region = 32 }
   0xb   : > { %v2678_v0 = vld [vmem:[%s3483_s1] ss:$0 sps:$4 sm:$0xcc]   ;;  %vm357_vm0 = vcmask 1041408   ;;  %s3487_s13 = smov (!%p161_p3, %s2090_s13), 1  ;;  %vm296_vm1 = vcmask 31744  }
   0xc   : > { %v231_v1 = vld [vmem:[%s3483_s1] sm:$0x3]  ;;  %v295_v2 = vrot.slane %v2678_v0, 2  ;;  %v867_v4 = vld [vmem:[%s3483_s1 + $0x4] sm:$0x3]  ;;  %s2668_s22 = smul.u32 328, %s3487_s13 }
   0xd   : > { %2665 = vmatprep.subr.msk.bf16.mxu1 %vm357_vm0, %v231_v1  ;;  %v614_v3 = vsel %vm357_vm0, %v231_v1, 0  ;;  %v2679_v5 = vld [vmem:[%s3483_s1 + $0x4] ss:$0 sps:$4 sm:$0xcc]   ;;  %v929_v19 = vsel %vm357_vm0, %v867_v4, 0  ;;  %s2669_s28 = smul.u32 156, %s3487_s13 }
   0xe   : > { %2539 = vmatpush3.bf16.msra.mxu1 %v614_v3  ;;  %2664 = vmatprep.subr.msk.bf16.mxu0 %vm357_vm0, %v295_v2  ;;  %v359_v6 = vsel %vm357_vm0, %v295_v2, 0  ;;  %v1225_v7 = vrot.slane %v2679_v5, 2  ;;  %s2895_s25 = scalar_lea.vmem %s3482_s0, %s2668_s22 }
   0xf   : > { %2497 = vmatpush3.bf16.msra.mxu0 %v359_v6  ;;  %v232_v8 = vld [vmem:[%s2895_s25 + $0x1] sm:$0xff]  ;;  %v233_v9 = vld [vmem:[%s2895_s25 + $0x9] sm:$0xff]  ;;  %v234_v13 = vld [vmem:[%s2895_s25 + $0x11] sm:$0xff]  ;;  %s3326_s4 = scalar_lea.vmem %s3485_s3, %s2669_s28 }
  0x10   : > { %2666 = vmatprep.subr.msk.bf16.mxu0 %vm357_vm0, %v867_v4  ;;  %2667 = vmatprep.subr.msk.bf16.mxu1 %vm357_vm0, %v1225_v7  ;;  %v172_v10 = vld [vmem:[%s2895_s25] sm:$0xff]  ;;  %v271_v11 = vpack.c.bf16 %v233_v9, %v232_v8  ;;  %v173_v12 = vld [vmem:[%s2895_s25 + $0x8] sm:$0xff]  ;;  %v174_v17 = vld [vmem:[%s2895_s25 + $0x10] sm:$0xff]  ;;  %v1287_v22 = vsel %vm357_vm0, %v1225_v7, 0 }
  0x11   : > { %v235_v14 = vld [vmem:[%s2895_s25 + $0x19] sm:$0xff]  ;;  %v211_v15 = vpack.c.bf16 %v173_v12, %v172_v10  ;;  %v236_v20 = vld [vmem:[%s2895_s25 + $0x21] sm:$0xff]  ;;  %v237_v23 = vld [vmem:[%s2895_s25 + $0x29] sm:$0xff] }
  0x12   : > { %v272_v16 = vpack.c.bf16 %v235_v14, %v234_v13  ;;  %v175_v18 = vld [vmem:[%s2895_s25 + $0x18] sm:$0xff]  ;;  %2498 = vmatprep.mubr.msk.bf16.mxu0 %vm296_vm1, %v271_v11  ;;  %v176_v24 = vld [vmem:[%s2895_s25 + $0x20] sm:$0xff]  ;;  %v177_v25 = vld [vmem:[%s2895_s25 + $0x28] sm:$0xff]  ;;  %v273_v26 = vpack.c.bf16 %v237_v23, %v236_v20 }
  0x13   : > { %v212_v21 = vpack.c.bf16 %v175_v18, %v174_v17  ;;  %2540 = vmatprep.mubr.msk.bf16.mxu1 %vm296_vm1, %v211_v15  ;;  %v213_v27 = vpack.c.bf16 %v177_v25, %v176_v24  ;;  %v238_v28 = vld [vmem:[%s2895_s25 + $0x31] sm:$0xff]  ;;  %v239_v29 = vld [vmem:[%s2895_s25 + $0x39] sm:$0xff]  ;;  %v240_v32 = vld [vmem:[%s2895_s25 + $0x41] sm:$0xff] }
  0x14   : > { %2499 = vmatmul.mubr.msk.bf16.vlgmr.msra.gmra.mxu0 %vm296_vm1, %v272_v16  ;;  %v178_v30 = vld [vmem:[%s2895_s25 + $0x30] sm:$0xff]  ;;  %v179_v31 = vld [vmem:[%s2895_s25 + $0x38] sm:$0xff]  ;;  %v180_v34 = vld [vmem:[%s2895_s25 + $0x40] sm:$0xff]  ;;  %v274_v36 = vpack.c.bf16 %v239_v29, %v238_v28 }
  0x15   : > { %2541 = vmatmul.mubr.msk.bf16.vlgmr.msra.gmra.mxu1 %vm296_vm1, %v212_v21  ;;  %2581 = vmatpush3.bf16.msra.mxu0 %v929_v19  ;;  %v241_v33 = vld [vmem:[%s2895_s25 + $0x49] sm:$0xff]  ;;  %v214_v37 = vpack.c.bf16 %v179_v31, %v178_v30  ;;  %v242_v40 = vld [vmem:[%s2895_s25 + $0x51] sm:$0xff]  ;;  %v243_v41 = vld [vmem:[%s2895_s25 + $0x59] sm:$0xff] }
  0x16   : > { %2623 = vmatpush3.bf16.msra.mxu1 %v1287_v22  ;;  %2502 = vmatprep.mubr.msk.bf16.mxu0 %vm296_vm1, %v273_v26  ;;  %v181_v35 = vld [vmem:[%s2895_s25 + $0x48] sm:$0xff]  ;;  %v275_v38 = vpack.c.bf16 %v241_v33, %v240_v32  ;;  %v182_v42 = vld [vmem:[%s2895_s25 + $0x50] sm:$0xff]  ;;  %v183_v43 = vld [vmem:[%s2895_s25 + $0x58] sm:$0xff]  ;;  %v276_v48 = vpack.c.bf16 %v243_v41, %v242_v40 }
  0x17   : > { %2544 = vmatprep.mubr.msk.bf16.mxu1 %vm296_vm1, %v213_v27  ;;  %v215_v39 = vpack.c.bf16 %v181_v35, %v180_v34  ;;  %v244_v44 = vld [vmem:[%s2895_s25 + $0x61] sm:$0xff]  ;;  %v245_v45 = vld [vmem:[%s2895_s25 + $0x69] sm:$0xff]  ;;  %v216_v49 = vpack.c.bf16 %v183_v43, %v182_v42  ;;  %v246_v52 = vld [vmem:[%s2895_s25 + $0x71] sm:$0xff] }
  0x18   : > { %v184_v46 = vld [vmem:[%s2895_s25 + $0x60] sm:$0xff]  ;;  %v185_v47 = vld [vmem:[%s2895_s25 + $0x68] sm:$0xff]  ;;  %v277_v50 = vpack.c.bf16 %v245_v45, %v244_v44  ;;  %v186_v54 = vld [vmem:[%s2895_s25 + $0x70] sm:$0xff] }
  0x19   : > { %v217_v51 = vpack.c.bf16 %v185_v47, %v184_v46  ;;  %v247_v53 = vld [vmem:[%s2895_s25 + $0x79] sm:$0xff]  ;;  %v248_v56 = vld [vmem:[%s2895_s25 + $0x81] sm:$0xff]  ;;  %v249_v57 = vld [vmem:[%s2895_s25 + $0x89] sm:$0xff] }
  0x1a   : > { %v187_v55 = vld [vmem:[%s2895_s25 + $0x78] sm:$0xff]  ;;  %v188_v58 = vld [vmem:[%s2895_s25 + $0x80] sm:$0xff]  ;;  %v189_v59 = vld [vmem:[%s2895_s25 + $0x88] sm:$0xff]  ;;  %v278_v60 = vpack.c.bf16 %v247_v53, %v246_v52  ;;  %v279_v62 = vpack.c.bf16 %v249_v57, %v248_v56 }
  0x1b   : > { %v218_v61 = vpack.c.bf16 %v187_v55, %v186_v54  ;;  %v219_v63 = vpack.c.bf16 %v189_v59, %v188_v58  ;;  %v250_v0 = vld [vmem:[%s2895_s25 + $0x91] sm:$0xff]  ;;  %v251_v1 = vld [vmem:[%s2895_s25 + $0x99] sm:$0xff]  ;;  %v252_v4 = vld [vmem:[%s2895_s25 + $0xa1] sm:$0xff] }
  0x1c   : > { %2503 = vmatmul.mubr.msk.bf16.gmra.mxu0 %vm296_vm1, %v274_v36  ;;  %v190_v2 = vld [vmem:[%s2895_s25 + $0x90] sm:$0xff]  ;;  %v191_v3 = vld [vmem:[%s2895_s25 + $0x98] sm:$0xff]  ;;  %v192_v6 = vld [vmem:[%s2895_s25 + $0xa0] sm:$0xff]  ;;  %v280_v8 = vpack.c.bf16 %v251_v1, %v250_v0 }
  0x1d   : > { %2545 = vmatmul.mubr.msk.bf16.gmra.mxu1 %vm296_vm1, %v214_v37  ;;  %2506 = vmatprep.mubr.msk.bf16.mxu0 %vm296_vm1, %v275_v38  ;;  %v253_v5 = vld [vmem:[%s2895_s25 + $0xa9] sm:$0xff]  ;;  %v220_v9 = vpack.c.bf16 %v191_v3, %v190_v2  ;;  %v254_v12 = vld [vmem:[%s2895_s25 + $0xb1] sm:$0xff]  ;;  %v255_v13 = vld [vmem:[%s2895_s25 + $0xb9] sm:$0xff] }
  0x1e   : > { %2548 = vmatprep.mubr.msk.bf16.mxu1 %vm296_vm1, %v215_v39  ;;  %v193_v7 = vld [vmem:[%s2895_s25 + $0xa8] sm:$0xff]  ;;  %v281_v10 = vpack.c.bf16 %v253_v5, %v252_v4  ;;  %v194_v14 = vld [vmem:[%s2895_s25 + $0xb0] sm:$0xff]  ;;  %v195_v15 = vld [vmem:[%s2895_s25 + $0xb8] sm:$0xff]  ;;  %v282_v20 = vpack.c.bf16 %v255_v13, %v254_v12 }
  0x1f   : > { %v221_v11 = vpack.c.bf16 %v193_v7, %v192_v6  ;;  %v256_v16 = vld [vmem:[%s2895_s25 + $0xc1] sm:$0xff]  ;;  %v257_v17 = vld [vmem:[%s2895_s25 + $0xc9] sm:$0xff]  ;;  %v222_v21 = vpack.c.bf16 %v195_v15, %v194_v14  ;;  %v258_v24 = vld [vmem:[%s2895_s25 + $0xd1] sm:$0xff] }
  0x20   : > { %v196_v18 = vld [vmem:[%s2895_s25 + $0xc0] sm:$0xff]  ;;  %v197_v19 = vld [vmem:[%s2895_s25 + $0xc8] sm:$0xff]  ;;  %v283_v22 = vpack.c.bf16 %v257_v17, %v256_v16  ;;  %v198_v26 = vld [vmem:[%s2895_s25 + $0xd0] sm:$0xff] }
  0x21   : > { %v223_v23 = vpack.c.bf16 %v197_v19, %v196_v18  ;;  %v259_v25 = vld [vmem:[%s2895_s25 + $0xd9] sm:$0xff]  ;;  %v260_v28 = vld [vmem:[%s2895_s25 + $0xe1] sm:$0xff]  ;;  %v261_v29 = vld [vmem:[%s2895_s25 + $0xe9] sm:$0xff] }
  0x22   : > { %v199_v27 = vld [vmem:[%s2895_s25 + $0xd8] sm:$0xff]  ;;  %v200_v30 = vld [vmem:[%s2895_s25 + $0xe0] sm:$0xff]  ;;  %v201_v31 = vld [vmem:[%s2895_s25 + $0xe8] sm:$0xff]  ;;  %v284_v32 = vpack.c.bf16 %v259_v25, %v258_v24  ;;  %v285_v34 = vpack.c.bf16 %v261_v29, %v260_v28 }
  0x23   : > { %v224_v33 = vpack.c.bf16 %v199_v27, %v198_v26  ;;  %v225_v35 = vpack.c.bf16 %v201_v31, %v200_v30  ;;  %v262_v36 = vld [vmem:[%s2895_s25 + $0xf1] sm:$0xff]  ;;  %v263_v37 = vld [vmem:[%s2895_s25 + $0xf9] sm:$0xff]  ;;  %v264_v40 = vld [vmem:[%s2895_s25 + $0x101] sm:$0xff] }
  0x24   : > { %2507 = vmatmul.mubr.msk.bf16.gmra.mxu0 %vm296_vm1, %v276_v48  ;;  %v202_v38 = vld [vmem:[%s2895_s25 + $0xf0] sm:$0xff]  ;;  %v203_v39 = vld [vmem:[%s2895_s25 + $0xf8] sm:$0xff]  ;;  %v204_v42 = vld [vmem:[%s2895_s25 + $0x100] sm:$0xff]  ;;  %v286_v44 = vpack.c.bf16 %v263_v37, %v262_v36 }
  0x25   : > { %2549 = vmatmul.mubr.msk.bf16.gmra.mxu1 %vm296_vm1, %v216_v49  ;;  %2510 = vmatprep.mubr.msk.bf16.mxu0 %vm296_vm1, %v277_v50  ;;  %v265_v41 = vld [vmem:[%s2895_s25 + $0x109] sm:$0xff]  ;;  %v226_v45 = vpack.c.bf16 %v203_v39, %v202_v38  ;;  %v266_v48 = vld [vmem:[%s2895_s25 + $0x111] sm:$0xff]  ;;  %v267_v49 = vld [vmem:[%s2895_s25 + $0x119] sm:$0xff] }
  0x26   : > { %2552 = vmatprep.mubr.msk.bf16.mxu1 %vm296_vm1, %v217_v51  ;;  %v205_v43 = vld [vmem:[%s2895_s25 + $0x108] sm:$0xff]  ;;  %v287_v46 = vpack.c.bf16 %v265_v41, %v264_v40  ;;  %v206_v50 = vld [vmem:[%s2895_s25 + $0x110] sm:$0xff]  ;;  %v207_v51 = vld [vmem:[%s2895_s25 + $0x118] sm:$0xff]  ;;  %v288_v56 = vpack.c.bf16 %v267_v49, %v266_v48 }
  0x27   : > { %v227_v47 = vpack.c.bf16 %v205_v43, %v204_v42  ;;  %v268_v52 = vld [vmem:[%s2895_s25 + $0x121] sm:$0xff]  ;;  %v269_v53 = vld [vmem:[%s2895_s25 + $0x129] sm:$0xff]  ;;  %v228_v57 = vpack.c.bf16 %v207_v51, %v206_v50  ;;  %v1162_v0 = vld [vmem:[%s2895_s25 + $0x13] sm:$0xff] }
  0x28   : > { %v208_v54 = vld [vmem:[%s2895_s25 + $0x120] sm:$0xff]  ;;  %v209_v55 = vld [vmem:[%s2895_s25 + $0x128] sm:$0xff]  ;;  %v289_v58 = vpack.c.bf16 %v269_v53, %v268_v52  ;;  %v1166_v12 = vld [vmem:[%s2895_s25 + $0x33] sm:$0xff] }
  0x29   : > { %v229_v59 = vpack.c.bf16 %v209_v55, %v208_v54  ;;  %v1163_v1 = vld [vmem:[%s2895_s25 + $0x1b] sm:$0xff]  ;;  %v811_v7 = vld [vmem:[%s2895_s25 + $0x2a] sm:$0xff]  ;;  %v1170_v24 = vld [vmem:[%s2895_s25 + $0x53] sm:$0xff] }
  0x2a   : > { %v1201_v5 = vpack.c.bf16 %v1163_v1, %v1162_v0  ;;  %v810_v6 = vld [vmem:[%s2895_s25 + $0x22] sm:$0xff]  ;;  %v815_v19 = vld [vmem:[%s2895_s25 + $0x4a] sm:$0xff]  ;;  %v1174_v36 = vld [vmem:[%s2895_s25 + $0x73] sm:$0xff] }
  0x2b   : > { %v1167_v13 = vld [vmem:[%s2895_s25 + $0x3b] sm:$0xff]  ;;  %v848_v14 = vpack.c.bf16 %v811_v7, %v810_v6  ;;  %v819_v31 = vld [vmem:[%s2895_s25 + $0x6a] sm:$0xff]  ;;  %v1178_v48 = vld [vmem:[%s2895_s25 + $0x93] sm:$0xff] }
  0x2c   : > { %2511 = vmatmul.mubr.msk.bf16.gmra.mxu0 %vm296_vm1, %v278_v60  ;;  %v270_v60 = vld [vmem:[%s2895_s25 + $0x131] sm:$0x3]  ;;  %v1203_v17 = vpack.c.bf16 %v1167_v13, %v1166_v12  ;;  %v814_v18 = vld [vmem:[%s2895_s25 + $0x42] sm:$0xff]  ;;  %v833_v7 = vld [vmem:[%s2895_s25 + $0xda] sm:$0xff] }
  0x2d   : > { %2553 = vmatmul.mubr.msk.bf16.gmra.mxu1 %vm296_vm1, %v218_v61  ;;  %2514 = vmatprep.mubr.msk.bf16.mxu0 %vm296_vm1, %v279_v62  ;;  %v210_v61 = vld [vmem:[%s2895_s25 + $0x130] sm:$0x3]  ;;  %v808_v62 = vld [vmem:[%s2895_s25 + $0x12] sm:$0xff]  ;;  %v290_v2 = vpack.c.bf16 %v270_v60, %v270_v60  ;;  %v1171_v25 = vld [vmem:[%s2895_s25 + $0x5b] sm:$0xff]  ;;  %v850_v26 = vpack.c.bf16 %v815_v19, %v814_v18 }
  0x2e   : > { %2556 = vmatprep.mubr.msk.bf16.mxu1 %vm296_vm1, %v219_v63  ;;  %v809_v63 = vld [vmem:[%s2895_s25 + $0x1a] sm:$0xff]  ;;  %v230_v3 = vpack.c.bf16 %v210_v61, %v210_v61  ;;  %v1205_v29 = vpack.c.bf16 %v1171_v25, %v1170_v24  ;;  %v818_v30 = vld [vmem:[%s2895_s25 + $0x62] sm:$0xff]  ;;  %v823_v43 = vld [vmem:[%s2895_s25 + $0x8a] sm:$0xff] }
  0x2f   : > { %v847_v4 = vpack.c.bf16 %v809_v63, %v808_v62  ;;  %v1175_v37 = vld [vmem:[%s2895_s25 + $0x7b] sm:$0xff]  ;;  %v852_v38 = vpack.c.bf16 %v819_v31, %v818_v30  ;;  %v827_v55 = vld [vmem:[%s2895_s25 + $0xaa] sm:$0xff]  ;;  %v1182_v60 = vld [vmem:[%s2895_s25 + $0xb3] sm:$0xff] }
  0x30   : > { %v1207_v41 = vpack.c.bf16 %v1175_v37, %v1174_v36  ;;  %v822_v42 = vld [vmem:[%s2895_s25 + $0x82] sm:$0xff]  ;;  %v832_v6 = vld [vmem:[%s2895_s25 + $0xd2] sm:$0xff]  ;;  %v837_v19 = vld [vmem:[%s2895_s25 + $0xfa] sm:$0xff] }
  0x31   : > { %v1179_v49 = vld [vmem:[%s2895_s25 + $0x9b] sm:$0xff]  ;;  %v854_v50 = vpack.c.bf16 %v823_v43, %v822_v42  ;;  %v859_v12 = vpack.c.bf16 %v833_v7, %v832_v6  ;;  %v836_v18 = vld [vmem:[%s2895_s25 + $0xf2] sm:$0xff] }
  0x32   : > { %v1209_v53 = vpack.c.bf16 %v1179_v49, %v1178_v48  ;;  %v826_v54 = vld [vmem:[%s2895_s25 + $0xa2] sm:$0xff]  ;;  %v861_v24 = vpack.c.bf16 %v837_v19, %v836_v18  ;;  %v840_v30 = vld [vmem:[%s2895_s25 + $0x112] sm:$0xff]  ;;  %v841_v31 = vld [vmem:[%s2895_s25 + $0x11a] sm:$0xff] }
  0x33   : > { %v1183_v61 = vld [vmem:[%s2895_s25 + $0xbb] sm:$0xff]  ;;  %v856_v62 = vpack.c.bf16 %v827_v55, %v826_v54  ;;  %v863_v36 = vpack.c.bf16 %v841_v31, %v840_v30  ;;  %v844_v42 = vld [vmem:[%s2895_s25 + $0x132] sm:$0xff] }
  0x34   : > { %2515 = vmatmul.mubr.msk.bf16.gmra.mxu0 %vm296_vm1, %v280_v8  ;;  %v1164_v8 = vld [vmem:[%s2895_s25 + $0x23] sm:$0xff]  ;;  %v1211_v1 = vpack.c.bf16 %v1183_v61, %v1182_v60  ;;  %v845_v43 = vld [vmem:[%s2895_s25 + $0x13a] sm:$0xff] }
  0x35   : > { %2557 = vmatmul.mubr.msk.bf16.gmra.mxu1 %vm296_vm1, %v220_v9  ;;  %2518 = vmatprep.mubr.msk.bf16.mxu0 %vm296_vm1, %v281_v10  ;;  %v1165_v9 = vld [vmem:[%s2895_s25 + $0x2b] sm:$0xff]  ;;  %v865_v48 = vpack.c.bf16 %v845_v43, %v844_v42 }
  0x36   : > { %2560 = vmatprep.mubr.msk.bf16.mxu1 %vm296_vm1, %v221_v11  ;;  %v812_v10 = vld [vmem:[%s2895_s25 + $0x32] sm:$0xff]  ;;  %v813_v11 = vld [vmem:[%s2895_s25 + $0x3a] sm:$0xff]  ;;  %v1202_v15 = vpack.c.bf16 %v1165_v9, %v1164_v8 }
  0x37   : > { %v849_v16 = vpack.c.bf16 %v813_v11, %v812_v10  ;;  %v1186_v8 = vld [vmem:[%s2895_s25 + $0xd3] sm:$0xff]  ;;  %v1187_v9 = vld [vmem:[%s2895_s25 + $0xdb] sm:$0xff] }
  0x38   : > { %v1213_v13 = vpack.c.bf16 %v1187_v9, %v1186_v8 }
  0x3c   : > { %2519 = vmatmul.mubr.msk.bf16.gmra.mxu0 %vm296_vm1, %v282_v20  ;;  %v1168_v20 = vld [vmem:[%s2895_s25 + $0x43] sm:$0xff] }
  0x3d   : > { %2561 = vmatmul.mubr.msk.bf16.gmra.mxu1 %vm296_vm1, %v222_v21  ;;  %2522 = vmatprep.mubr.msk.bf16.mxu0 %vm296_vm1, %v283_v22  ;;  %v1169_v21 = vld [vmem:[%s2895_s25 + $0x4b] sm:$0xff] }
  0x3e   : > { %2564 = vmatprep.mubr.msk.bf16.mxu1 %vm296_vm1, %v223_v23  ;;  %v816_v22 = vld [vmem:[%s2895_s25 + $0x52] sm:$0xff]  ;;  %v817_v23 = vld [vmem:[%s2895_s25 + $0x5a] sm:$0xff]  ;;  %v1204_v27 = vpack.c.bf16 %v1169_v21, %v1168_v20 }
  0x3f   : > { %v851_v28 = vpack.c.bf16 %v817_v23, %v816_v22  ;;  %v1190_v20 = vld [vmem:[%s2895_s25 + $0xf3] sm:$0xff]  ;;  %v1191_v21 = vld [vmem:[%s2895_s25 + $0xfb] sm:$0xff] }
  0x40   : > { %v1215_v25 = vpack.c.bf16 %v1191_v21, %v1190_v20 }
  0x44   : > { %2523 = vmatmul.mubr.msk.bf16.gmra.mxu0 %vm296_vm1, %v284_v32  ;;  %v1172_v32 = vld [vmem:[%s2895_s25 + $0x63] sm:$0xff] }
  0x45   : > { %2565 = vmatmul.mubr.msk.bf16.gmra.mxu1 %vm296_vm1, %v224_v33  ;;  %2526 = vmatprep.mubr.msk.bf16.mxu0 %vm296_vm1, %v285_v34  ;;  %v1173_v33 = vld [vmem:[%s2895_s25 + $0x6b] sm:$0xff] }
  0x46   : > { %2568 = vmatprep.mubr.msk.bf16.mxu1 %vm296_vm1, %v225_v35  ;;  %v820_v34 = vld [vmem:[%s2895_s25 + $0x72] sm:$0xff]  ;;  %v821_v35 = vld [vmem:[%s2895_s25 + $0x7a] sm:$0xff]  ;;  %v1206_v39 = vpack.c.bf16 %v1173_v33, %v1172_v32 }
  0x47   : > { %v853_v40 = vpack.c.bf16 %v821_v35, %v820_v34  ;;  %v1194_v32 = vld [vmem:[%s2895_s25 + $0x113] sm:$0xff]  ;;  %v1195_v33 = vld [vmem:[%s2895_s25 + $0x11b] sm:$0xff] }
  0x48   : > { %v1217_v37 = vpack.c.bf16 %v1195_v33, %v1194_v32 }
  0x4c   : > { %2527 = vmatmul.mubr.msk.bf16.gmra.mxu0 %vm296_vm1, %v286_v44  ;;  %v1176_v44 = vld [vmem:[%s2895_s25 + $0x83] sm:$0xff] }
  0x4d   : > { %2569 = vmatmul.mubr.msk.bf16.gmra.mxu1 %vm296_vm1, %v226_v45  ;;  %2530 = vmatprep.mubr.msk.bf16.mxu0 %vm296_vm1, %v287_v46  ;;  %v1177_v45 = vld [vmem:[%s2895_s25 + $0x8b] sm:$0xff] }
  0x4e   : > { %2572 = vmatprep.mubr.msk.bf16.mxu1 %vm296_vm1, %v227_v47  ;;  %v824_v46 = vld [vmem:[%s2895_s25 + $0x92] sm:$0xff]  ;;  %v825_v47 = vld [vmem:[%s2895_s25 + $0x9a] sm:$0xff]  ;;  %v1208_v51 = vpack.c.bf16 %v1177_v45, %v1176_v44 }
  0x4f   : > { %v855_v52 = vpack.c.bf16 %v825_v47, %v824_v46  ;;  %v1198_v44 = vld [vmem:[%s2895_s25 + $0x133] sm:$0xff]  ;;  %v1199_v45 = vld [vmem:[%s2895_s25 + $0x13b] sm:$0xff] }
  0x50   : > { %v1219_v49 = vpack.c.bf16 %v1199_v45, %v1198_v44 }
  0x54   : > { %2531 = vmatmul.mubr.msk.bf16.gmra.mxu0 %vm296_vm1, %v288_v56  ;;  %v1180_v56 = vld [vmem:[%s2895_s25 + $0xa3] sm:$0xff] }
  0x55   : > { %2573 = vmatmul.mubr.msk.bf16.gmra.mxu1 %vm296_vm1, %v228_v57  ;;  %2534 = vmatprep.mubr.msk.bf16.mxu0 %vm296_vm1, %v289_v58  ;;  %v1181_v57 = vld [vmem:[%s2895_s25 + $0xab] sm:$0xff] }
  0x56   : > { %2576 = vmatprep.mubr.msk.bf16.mxu1 %vm296_vm1, %v229_v59  ;;  %v828_v58 = vld [vmem:[%s2895_s25 + $0xb2] sm:$0xff]  ;;  %v829_v59 = vld [vmem:[%s2895_s25 + $0xba] sm:$0xff]  ;;  %v1210_v63 = vpack.c.bf16 %v1181_v57, %v1180_v56 }
  0x57   : > { %v857_v0 = vpack.c.bf16 %v829_v59, %v828_v58 }
  0x5c   : > { %2535 = vmatmul.mubr.msk.bf16.gmra.mxu0 %vm296_vm1, %v290_v2  ;;  %v830_v2 = vld [vmem:[%s2895_s25 + $0xc2] sm:$0xff] }
  0x5d   : > { %2577 = vmatmul.mubr.msk.bf16.gmra.mxu1 %vm296_vm1, %v230_v3  ;;  %2582 = vmatprep.mubr.msk.bf16.mxu0 %vm296_vm1, %v847_v4  ;;  %v831_v3 = vld [vmem:[%s2895_s25 + $0xca] sm:$0xff] }
  0x5e   : > { %2624 = vmatprep.mubr.msk.bf16.mxu1 %vm296_vm1, %v1201_v5  ;;  %v1184_v4 = vld [vmem:[%s2895_s25 + $0xc3] sm:$0xff]  ;;  %v1185_v5 = vld [vmem:[%s2895_s25 + $0xcb] sm:$0xff]  ;;  %v858_v10 = vpack.c.bf16 %v831_v3, %v830_v2 }
  0x5f   : > { %v1212_v11 = vpack.c.bf16 %v1185_v5, %v1184_v4 }
  0x64   : > { %2583 = vmatmul.mubr.msk.bf16.vlgmr.msra.gmra.mxu0 %vm296_vm1, %v848_v14  ;;  %v834_v14 = vld [vmem:[%s2895_s25 + $0xe2] sm:$0xff] }
  0x65   : > { %2625 = vmatmul.mubr.msk.bf16.vlgmr.msra.gmra.mxu1 %vm296_vm1, %v1202_v15  ;;  %2586 = vmatprep.mubr.msk.bf16.mxu0 %vm296_vm1, %v849_v16  ;;  %v835_v15 = vld [vmem:[%s2895_s25 + $0xea] sm:$0xff] }
  0x66   : > { %2628 = vmatprep.mubr.msk.bf16.mxu1 %vm296_vm1, %v1203_v17  ;;  %v1188_v16 = vld [vmem:[%s2895_s25 + $0xe3] sm:$0xff]  ;;  %v1189_v17 = vld [vmem:[%s2895_s25 + $0xeb] sm:$0xff]  ;;  %v860_v22 = vpack.c.bf16 %v835_v15, %v834_v14 }
  0x67   : > { %v1214_v23 = vpack.c.bf16 %v1189_v17, %v1188_v16 }
  0x6c   : > { %2587 = vmatmul.mubr.msk.bf16.gmra.mxu0 %vm296_vm1, %v850_v26  ;;  %v838_v26 = vld [vmem:[%s2895_s25 + $0x102] sm:$0xff] }
  0x6d   : > { %2629 = vmatmul.mubr.msk.bf16.gmra.mxu1 %vm296_vm1, %v1204_v27  ;;  %2590 = vmatprep.mubr.msk.bf16.mxu0 %vm296_vm1, %v851_v28  ;;  %v839_v27 = vld [vmem:[%s2895_s25 + $0x10a] sm:$0xff] }
  0x6e   : > { %2632 = vmatprep.mubr.msk.bf16.mxu1 %vm296_vm1, %v1205_v29  ;;  %v1192_v28 = vld [vmem:[%s2895_s25 + $0x103] sm:$0xff]  ;;  %v1193_v29 = vld [vmem:[%s2895_s25 + $0x10b] sm:$0xff]  ;;  %v862_v34 = vpack.c.bf16 %v839_v27, %v838_v26 }
  0x6f   : > { %v1216_v35 = vpack.c.bf16 %v1193_v29, %v1192_v28 }
  0x74   : > { %2591 = vmatmul.mubr.msk.bf16.gmra.mxu0 %vm296_vm1, %v852_v38  ;;  %v842_v38 = vld [vmem:[%s2895_s25 + $0x122] sm:$0xff] }
  0x75   : > { %2633 = vmatmul.mubr.msk.bf16.gmra.mxu1 %vm296_vm1, %v1206_v39  ;;  %2594 = vmatprep.mubr.msk.bf16.mxu0 %vm296_vm1, %v853_v40  ;;  %v843_v39 = vld [vmem:[%s2895_s25 + $0x12a] sm:$0xff] }
  0x76   : > { %2636 = vmatprep.mubr.msk.bf16.mxu1 %vm296_vm1, %v1207_v41  ;;  %v1196_v40 = vld [vmem:[%s2895_s25 + $0x123] sm:$0xff]  ;;  %v1197_v41 = vld [vmem:[%s2895_s25 + $0x12b] sm:$0xff]  ;;  %v864_v46 = vpack.c.bf16 %v843_v39, %v842_v38 }
  0x77   : > { %v1218_v47 = vpack.c.bf16 %v1197_v41, %v1196_v40 }
  0x7c   : > { %2595 = vmatmul.mubr.msk.bf16.gmra.mxu0 %vm296_vm1, %v854_v50  ;;  %v846_v50 = vld [vmem:[%s2895_s25 + $0x142] sm:$0x3] }
  0x7d   : > { %2637 = vmatmul.mubr.msk.bf16.gmra.mxu1 %vm296_vm1, %v1208_v51  ;;  %2598 = vmatprep.mubr.msk.bf16.mxu0 %vm296_vm1, %v855_v52  ;;  %v1200_v51 = vld [vmem:[%s2895_s25 + $0x143] sm:$0x3]  ;;  %v866_v52 = vpack.c.bf16 %v846_v50, %v846_v50 }
  0x7e   : > { %2640 = vmatprep.mubr.msk.bf16.mxu1 %vm296_vm1, %v1209_v53  ;;  %v1220_v53 = vpack.c.bf16 %v1200_v51, %v1200_v51 }
  0x84   : > { %2599 = vmatmul.mubr.msk.bf16.gmra.mxu0 %vm296_vm1, %v856_v62 }
  0x85   : > { %2641 = vmatmul.mubr.msk.bf16.gmra.mxu1 %vm296_vm1, %v1210_v63  ;;  %2602 = vmatprep.mubr.msk.bf16.mxu0 %vm296_vm1, %v857_v0 }
  0x86   : > { %2644 = vmatprep.mubr.msk.bf16.mxu1 %vm296_vm1, %v1211_v1 }
  0x8c   : > { %2603 = vmatmul.mubr.msk.bf16.gmra.mxu0 %vm296_vm1, %v858_v10 }
  0x8d   : > { %2645 = vmatmul.mubr.msk.bf16.gmra.mxu1 %vm296_vm1, %v1212_v11  ;;  %2606 = vmatprep.mubr.msk.bf16.mxu0 %vm296_vm1, %v859_v12 }
  0x8e   : > { %2648 = vmatprep.mubr.msk.bf16.mxu1 %vm296_vm1, %v1213_v13 }
  0x94   : > { %2607 = vmatmul.mubr.msk.bf16.gmra.mxu0 %vm296_vm1, %v860_v22 }
  0x95   : > { %2649 = vmatmul.mubr.msk.bf16.gmra.mxu1 %vm296_vm1, %v1214_v23  ;;  %2610 = vmatprep.mubr.msk.bf16.mxu0 %vm296_vm1, %v861_v24 }
  0x96   : > { %2652 = vmatprep.mubr.msk.bf16.mxu1 %vm296_vm1, %v1215_v25 }
  0x9c   : > { %2611 = vmatmul.mubr.msk.bf16.gmra.mxu0 %vm296_vm1, %v862_v34 }
  0x9d   : > { %2653 = vmatmul.mubr.msk.bf16.gmra.mxu1 %vm296_vm1, %v1216_v35  ;;  %2614 = vmatprep.mubr.msk.bf16.mxu0 %vm296_vm1, %v863_v36 }
  0x9e   : > { %2656 = vmatprep.mubr.msk.bf16.mxu1 %vm296_vm1, %v1217_v37 }
  0xa4   : > { %2615 = vmatmul.mubr.msk.bf16.gmra.mxu0 %vm296_vm1, %v864_v46 }
  0xa5   : > { %2657 = vmatmul.mubr.msk.bf16.gmra.mxu1 %vm296_vm1, %v1218_v47  ;;  %2618 = vmatprep.mubr.msk.bf16.mxu0 %vm296_vm1, %v865_v48 }
  0xa6   : > { %2660 = vmatprep.mubr.msk.bf16.mxu1 %vm296_vm1, %v1219_v49 }
  0xac   : > { %2619 = vmatmul.mubr.msk.bf16.gmra.mxu0 %vm296_vm1, %v866_v52 }
  0xad   : > { %2661 = vmatmul.mubr.msk.bf16.gmra.mxu1 %vm296_vm1, %v1220_v53 }
  0xd4   : > { %v2500_v54 = vpop.f32.mrf.mxu0 }
  0xd5   : > { %v2542_v55 = vpop.f32.mrf.mxu1 }
  0xd6   : > { %v3136_v56 = vadd.f32 %v2542_v55, %v2500_v54  ;;  %v395_v57 = vpop.f32.mrf.mxu0 }
  0xd7   : > { %v650_v58 = vpop.f32.mrf.mxu1 }
  0xd8   : > { %v3138_v59 = vadd.f32 %v650_v58, %v395_v57  ;;  %v2501_v60 = vpop.f32.mrf.mxu0 }
  0xd9   : > { %v2543_v61 = vpop.f32.mrf.mxu1 }
  0xda   : > { %v3140_v62 = vadd.f32 %v2543_v61, %v2501_v60  ;;  %v398_v63 = vpop.f32.mrf.mxu0 }
  0xdb   : > { %v653_v0 = vpop.f32.mrf.mxu1 }
  0xdc   : > { %v3142_v1 = vadd.f32 %v653_v0, %v398_v63  ;;  %v2504_v2 = vpop.f32.mrf.mxu0 }
  0xdd   : > { %v2546_v3 = vpop.f32.mrf.mxu1 }
  0xde   : > { %v3144_v4 = vadd.f32 %v2546_v3, %v2504_v2  ;;  %v411_v5 = vpop.f32.mrf.mxu0 }
  0xdf   : > { %v666_v6 = vpop.f32.mrf.mxu1 }
  0xe0   : > { %v3146_v7 = vadd.f32 %v666_v6, %v411_v5  ;;  %v2505_v8 = vpop.f32.mrf.mxu0 }
  0xe1   : > { %v2547_v9 = vpop.f32.mrf.mxu1 }
  0xe2   : > { %v3148_v10 = vadd.f32 %v2547_v9, %v2505_v8  ;;  %v414_v11 = vpop.f32.mrf.mxu0 }
  0xe3   : > { %v669_v12 = vpop.f32.mrf.mxu1 }
  0xe4   : > { %v3150_v13 = vadd.f32 %v669_v12, %v414_v11  ;;  %v2508_v14 = vpop.f32.mrf.mxu0 }
  0xe5   : > { %v2550_v15 = vpop.f32.mrf.mxu1 }
  0xe6   : > { %v3152_v16 = vadd.f32 %v2550_v15, %v2508_v14  ;;  %v427_v17 = vpop.f32.mrf.mxu0 }
  0xe7   : > { %v682_v18 = vpop.f32.mrf.mxu1 }
  0xe8   : > { %v3154_v19 = vadd.f32 %v682_v18, %v427_v17  ;;  %v2509_v20 = vpop.f32.mrf.mxu0 }
  0xe9   : > { %v2551_v21 = vpop.f32.mrf.mxu1 }
  0xea   : > { %v3156_v22 = vadd.f32 %v2551_v21, %v2509_v20  ;;  %v430_v23 = vpop.f32.mrf.mxu0 }
  0xeb   : > { %v685_v24 = vpop.f32.mrf.mxu1 }
  0xec   : > { %v3158_v25 = vadd.f32 %v685_v24, %v430_v23  ;;  %v2512_v26 = vpop.f32.mrf.mxu0 }
  0xed   : > { %v2554_v27 = vpop.f32.mrf.mxu1 }
  0xee   : > { %v3160_v28 = vadd.f32 %v2554_v27, %v2512_v26  ;;  %v443_v29 = vpop.f32.mrf.mxu0 }
  0xef   : > { %v698_v30 = vpop.f32.mrf.mxu1 }
  0xf0   : > { %v3162_v31 = vadd.f32 %v698_v30, %v443_v29  ;;  %v2513_v32 = vpop.f32.mrf.mxu0 }
  0xf1   : > { %v2555_v33 = vpop.f32.mrf.mxu1 }
  0xf2   : > { %v3164_v34 = vadd.f32 %v2555_v33, %v2513_v32  ;;  %v446_v35 = vpop.f32.mrf.mxu0 }
  0xf3   : > { %v701_v36 = vpop.f32.mrf.mxu1 }
  0xf4   : > { %v3166_v37 = vadd.f32 %v701_v36, %v446_v35  ;;  %v2516_v38 = vpop.f32.mrf.mxu0 }
  0xf5   : > { %v2558_v39 = vpop.f32.mrf.mxu1 }
  0xf6   : > { %v3168_v40 = vadd.f32 %v2558_v39, %v2516_v38  ;;  %v459_v41 = vpop.f32.mrf.mxu0 }
  0xf7   : > { %v714_v42 = vpop.f32.mrf.mxu1 }
  0xf8   : > { %v3170_v43 = vadd.f32 %v714_v42, %v459_v41  ;;  %v2517_v44 = vpop.f32.mrf.mxu0 }
  0xf9   : > { %v2559_v45 = vpop.f32.mrf.mxu1 }
  0xfa   : > { %v3172_v46 = vadd.f32 %v2559_v45, %v2517_v44  ;;  %v462_v47 = vpop.f32.mrf.mxu0 }
  0xfb   : > { %v717_v48 = vpop.f32.mrf.mxu1 }
  0xfc   : > { %v3174_v49 = vadd.f32 %v717_v48, %v462_v47  ;;  %v2520_v50 = vpop.f32.mrf.mxu0 }
  0xfd   : > { %v2562_v51 = vpop.f32.mrf.mxu1 }
  0xfe   : > { %v3176_v52 = vadd.f32 %v2562_v51, %v2520_v50  ;;  %v475_v53 = vpop.f32.mrf.mxu0 }
  0xff   : > { %v730_v54 = vpop.f32.mrf.mxu1 }
 0x100   : > { %v3178_v55 = vadd.f32 %v730_v54, %v475_v53  ;;  %v2521_v57 = vpop.f32.mrf.mxu0 }
 0x101   : > { %v2563_v58 = vpop.f32.mrf.mxu1 }
 0x102   : > { %v3180_v60 = vadd.f32 %v2563_v58, %v2521_v57  ;;  %v478_v61 = vpop.f32.mrf.mxu0 }
 0x103   : > { %v733_v63 = vpop.f32.mrf.mxu1 }
 0x104   : > { %v3182_v0 = vadd.f32 %v733_v63, %v478_v61  ;;  %v2524_v2 = vpop.f32.mrf.mxu0 }
 0x105   : > { %v2566_v3 = vpop.f32.mrf.mxu1 }
 0x106   : > { %v3184_v5 = vadd.f32 %v2566_v3, %v2524_v2  ;;  %v491_v6 = vpop.f32.mrf.mxu0 }
 0x107   : > { %v746_v8 = vpop.f32.mrf.mxu1 }
 0x108   : > { %v3186_v9 = vadd.f32 %v746_v8, %v491_v6  ;;  %v2525_v11 = vpop.f32.mrf.mxu0 }
 0x109   : > { %v2567_v12 = vpop.f32.mrf.mxu1 }
 0x10a   : > { %v3188_v14 = vadd.f32 %v2567_v12, %v2525_v11  ;;  %v494_v15 = vpop.f32.mrf.mxu0 }
 0x10b   : > { %v749_v17 = vpop.f32.mrf.mxu1 }
 0x10c   : > { %v3190_v18 = vadd.f32 %v749_v17, %v494_v15  ;;  %v2528_v20 = vpop.f32.mrf.mxu0 }
 0x10d   : > { %v2570_v21 = vpop.f32.mrf.mxu1 }
 0x10e   : > { %v3192_v23 = vadd.f32 %v2570_v21, %v2528_v20  ;;  %v507_v24 = vpop.f32.mrf.mxu0 }
 0x10f   : > { %v762_v26 = vpop.f32.mrf.mxu1 }
 0x110   : > { %v3194_v27 = vadd.f32 %v762_v26, %v507_v24  ;;  %v2529_v29 = vpop.f32.mrf.mxu0  ;;  %v3218_v24 = vld [vmem:[%s3484_s2] ss:$0 sm:$0xff] }
 0x111   : > { %v2571_v30 = vpop.f32.mrf.mxu1 }
 0x112   : > { %v3196_v32 = vadd.f32 %v2571_v30, %v2529_v29  ;;  %v510_v33 = vpop.f32.mrf.mxu0 }
 0x113   : > { %v765_v35 = vpop.f32.mrf.mxu1 }
 0x114   : > { %v3198_v36 = vadd.f32 %v765_v35, %v510_v33  ;;  %v2532_v38 = vpop.f32.mrf.mxu0 }
 0x115   : > { %v2574_v39 = vpop.f32.mrf.mxu1 }
 0x116   : > { %v3200_v41 = vadd.f32 %v2574_v39, %v2532_v38  ;;  %v523_v42 = vpop.f32.mrf.mxu0 }
 0x117   : > { %v778_v44 = vpop.f32.mrf.mxu1 }
 0x118   : > { %v3202_v45 = vadd.f32 %v778_v44, %v523_v42  ;;  %v2533_v47 = vpop.f32.mrf.mxu0 }
 0x119   : > { %v2575_v48 = vpop.f32.mrf.mxu1 }
 0x11a   : > { %v3204_v50 = vadd.f32 %v2575_v48, %v2533_v47  ;;  %v526_v51 = vpop.f32.mrf.mxu0 }
 0x11b   : > { %v781_v53 = vpop.f32.mrf.mxu1 }
 0x11c   : > { %v3206_v54 = vadd.f32 %v781_v53, %v526_v51  ;;  %v2536_v57 = vpop.f32.mrf.mxu0 }
 0x11d   : > { %v2578_v58 = vpop.f32.mrf.mxu1 }
 0x11e   : > { %v3208_v61 = vadd.f32 %v2578_v58, %v2536_v57  ;;  %v539_v63 = vpop.f32.mrf.mxu0 }
 0x11f   : > { %v794_v2 = vpop.f32.mrf.mxu1 }
 0x120   : > { %v3210_v3 = vadd.f32 %v794_v2, %v539_v63  ;;  %v2537_v6 = vpop.f32.mrf.mxu0 }
 0x121   : > { %v2579_v8 = vpop.f32.mrf.mxu1 }
 0x122   : > { %v542_v11 = vpop.f32.mrf.mxu0 }
 0x123   : > { %v797_v12 = vpop.f32.mrf.mxu1 }
 0x124   : > { %v3212_v15 = vadd.f32 %v797_v12, %v542_v11  ;;  %v2584_v17 = vpop.f32.mrf.mxu0 }
 0x125   : > { %v1125_v20 = vadd.f32 %v2584_v17, %v3136_v56  ;;  %v2626_v21 = vpop.f32.mrf.mxu1 }
 0x126   : > { %v965_v26 = vpop.f32.mrf.mxu0 }
 0x127   : > { %v1483_v29 = vadd.f32 %v2626_v21, %v1125_v20  ;;  %v1123_v30 = vadd.f32 %v965_v26, %v3138_v59  ;;  %v1323_v33 = vpop.f32.mrf.mxu1 }
 0x128   : > { %v2585_v35 = vpop.f32.mrf.mxu0 }
 0x129   : > { %v3222_v38 = vadd.f32 %v3218_v24, %v1483_v29  ;;  %v1481_v39 = vadd.f32 %v1323_v33, %v1123_v30  ;;  %v1126_v42 = vadd.f32 %v2585_v35, %v3140_v62  ;;  %v2627_v44 = vpop.f32.mrf.mxu1 }
 0x12a   : > { %v968_v56 = vpop.f32.mrf.mxu0 }
 0x12b   : > { %v2182_v47 = vmul.f32 -1.442695, %v3222_v38  ;;  %v3227_v48 = vadd.f32 %v3218_v24, %v1481_v39  ;;  %v1484_v51 = vadd.f32 %v2627_v44, %v1126_v42  ;;  %v1124_v53 = vadd.f32 %v968_v56, %v3142_v1  ;;  %v1326_v57 = vpop.f32.mrf.mxu1 }
 0x12c   : > { %v2588_v59 = vpop.f32.mrf.mxu0 }
 0x12d   : > { %2680 = vpow2.f32 %v2182_v47  ;;  %v2180_v58 = vmul.f32 -1.442695, %v3227_v48  ;;  %v3232_v63 = vadd.f32 %v3218_v24, %v1484_v51  ;;  %v1482_v2 = vadd.f32 %v1326_v57, %v1124_v53  ;;  %v2630_v62 = vpop.f32.mrf.mxu1 }
 0x12e   : > { %v1129_v6 = vadd.f32 %v2588_v59, %v3144_v4  ;;  %v981_v8 = vpop.f32.mrf.mxu0 }
 0x12f   : > { %2682 = vpow2.f32 %v2180_v58  ;;  %v2183_v11 = vmul.f32 -1.442695, %v3232_v63  ;;  %v3237_v12 = vadd.f32 %v3218_v24, %v1482_v2  ;;  %v1127_v1 = vadd.f32 %v981_v8, %v3146_v7  ;;  %v1339_v17 = vpop.f32.mrf.mxu1 }
 0x130   : > { %v1487_v20 = vadd.f32 %v2630_v62, %v1129_v6  ;;  %v2589_v21 = vpop.f32.mrf.mxu0 }
 0x131   : > { %2684 = vpow2.f32 %v2183_v11  ;;  %v2181_v26 = vmul.f32 -1.442695, %v3237_v12  ;;  %v1485_v29 = vadd.f32 %v1339_v17, %v1127_v1  ;;  %v1130_v30 = vadd.f32 %v2589_v21, %v3148_v10  ;;  %v2631_v33 = vpop.f32.mrf.mxu1 }
 0x132   : > { %v3243_v4 = vadd.f32 %v3218_v24, %v1487_v20  ;;  %v984_v35 = vpop.f32.mrf.mxu0 }
 0x133   : > { %2686 = vpow2.f32 %v2181_v26  ;;  %v3246_v39 = vadd.f32 %v3218_v24, %v1485_v29  ;;  %v1488_v42 = vadd.f32 %v2631_v33, %v1130_v30  ;;  %v1128_v7 = vadd.f32 %v984_v35, %v3150_v13  ;;  %v1342_v44 = vpop.f32.mrf.mxu1 }
 0x134   : > { %v2186_v56 = vmul.f32 -1.442695, %v3243_v4  ;;  %v2592_v47 = vpop.f32.mrf.mxu0 }
 0x135   : > { %v2184_v51 = vmul.f32 -1.442695, %v3246_v39  ;;  %v3252_v10 = vadd.f32 %v3218_v24, %v1488_v42  ;;  %v1486_v53 = vadd.f32 %v1342_v44, %v1128_v7  ;;  %v1133_v57 = vadd.f32 %v2592_v47, %v3152_v16  ;;  %v2634_v59 = vpop.f32.mrf.mxu1 }
 0x136   : > { %2688 = vpow2.f32 %v2186_v56  ;;  %v997_v58 = vpop.f32.mrf.mxu0 }
 0x137   : > { %2690 = vpow2.f32 %v2184_v51  ;;  %v2187_v2 = vmul.f32 -1.442695, %v3252_v10  ;;  %v3257_v13 = vadd.f32 %v3218_v24, %v1486_v53  ;;  %v1491_v62 = vadd.f32 %v2634_v59, %v1133_v57  ;;  %v1355_v6 = vpop.f32.mrf.mxu1 }
 0x138   : > { %v1131_v8 = vadd.f32 %v997_v58, %v3154_v19  ;;  %v2593_v11 = vpop.f32.mrf.mxu0 }
 0x139   : > { %2692 = vpow2.f32 %v2187_v2  ;;  %v2185_v1 = vmul.f32 -1.442695, %v3257_v13  ;;  %v3262_v17 = vadd.f32 %v3218_v24, %v1491_v62  ;;  %v1134_v16 = vadd.f32 %v2593_v11, %v3156_v22  ;;  %v2635_v20 = vpop.f32.mrf.mxu1 }
 0x13a   : > { %v2681_v21 = vpop.eup %2680  ;;  %v1489_v26 = vadd.f32 %v1355_v6, %v1131_v8  ;;  %v1000_v29 = vpop.f32.mrf.mxu0 }
 0x13b   : > { %v1685_v30 = vadd.f32 1.0, %v2681_v21  ;;  %2694 = vpow2.f32 %v2185_v1  ;;  %v2190_v33 = vmul.f32 -1.442695, %v3262_v17  ;;  %v1492_v35 = vadd.f32 %v2635_v20, %v1134_v16  ;;  %v1358_v42 = vpop.f32.mrf.mxu1 }
 0x13c   : > { %v2683_v19 = vpop.eup %2682  ;;  %v3267_v7 = vadd.f32 %v3218_v24, %v1489_v26  ;;  %v1132_v44 = vadd.f32 %v1000_v29, %v3158_v25  ;;  %v2596_v56 = vpop.f32.mrf.mxu0 }
 0x13d   : > { %2696 = vrcp.f32 %v1685_v30  ;;  %v1683_v47 = vadd.f32 1.0, %v2683_v19  ;;  %v3271_v22 = vadd.f32 %v3218_v24, %v1492_v35  ;;  %v1137_v51 = vadd.f32 %v2596_v56, %v3160_v28  ;;  %v2638_v53 = vpop.f32.mrf.mxu1 }
 0x13e   : > { %v2685_v57 = vpop.eup %2684  ;;  %2698 = vpow2.f32 %v2190_v33  ;;  %v2188_v59 = vmul.f32 -1.442695, %v3267_v7  ;;  %v1490_v58 = vadd.f32 %v1358_v42, %v1132_v44  ;;  %v1013_v2 = vpop.f32.mrf.mxu0 }
 0x13f   : > { %2700 = vrcp.f32 %v1683_v47  ;;  %v1686_v62 = vadd.f32 1.0, %v2685_v57  ;;  %v2191_v6 = vmul.f32 -1.442695, %v3271_v22  ;;  %v1495_v25 = vadd.f32 %v2638_v53, %v1137_v51  ;;  %v1371_v8 = vpop.f32.mrf.mxu1 }
 0x140   : > { %v2687_v11 = vpop.eup %2686  ;;  %2702 = vpow2.f32 %v2188_v59  ;;  %v3277_v1 = vadd.f32 %v3218_v24, %v1490_v58  ;;  %v1135_v28 = vadd.f32 %v1013_v2, %v3162_v31  ;;  %v2597_v16 = vpop.f32.mrf.mxu0 }
 0x141   : > { %2704 = vrcp.f32 %v1686_v62  ;;  %v1684_v20 = vadd.f32 1.0, %v2687_v11  ;;  %v3281_v21 = vadd.f32 %v3218_v24, %v1495_v25  ;;  %v1138_v26 = vadd.f32 %v2597_v16, %v3164_v34  ;;  %v2639_v29 = vpop.f32.mrf.mxu1 }
 0x142   : > { %2706 = vpow2.f32 %v2191_v6  ;;  %v2189_v30 = vmul.f32 -1.442695, %v3277_v1  ;;  %v1493_v33 = vadd.f32 %v1371_v8, %v1135_v28  ;;  %v1016_v35 = vpop.f32.mrf.mxu0 }
 0x143   : > { %v2689_v42 = vpop.eup %2688  ;;  %2708 = vrcp.f32 %v1684_v20  ;;  %v2194_v19 = vmul.f32 -1.442695, %v3281_v21  ;;  %v1496_v44 = vadd.f32 %v2639_v29, %v1138_v26  ;;  %v1136_v31 = vadd.f32 %v1016_v35, %v3166_v37  ;;  %v1374_v56 = vpop.f32.mrf.mxu1 }
 0x144   : > { %v2691_v47 = vpop.eup %2690  ;;  %v1689_v51 = vadd.f32 1.0, %v2689_v42  ;;  %2710 = vpow2.f32 %v2189_v30  ;;  %v3288_v53 = vadd.f32 %v3218_v24, %v1493_v33  ;;  %v2600_v34 = vpop.f32.mrf.mxu0 }
 0x145   : > { %v1687_v57 = vadd.f32 1.0, %v2691_v47  ;;  %2712 = vpow2.f32 %v2194_v19  ;;  %v3291_v59 = vadd.f32 %v3218_v24, %v1496_v44  ;;  %v1494_v58 = vadd.f32 %v1374_v56, %v1136_v31  ;;  %v2642_v2 = vpop.f32.mrf.mxu1 }
 0x146   : > { %v2693_v62 = vpop.eup %2692  ;;  %2714 = vrcp.f32 %v1689_v51  ;;  %v2192_v6 = vmul.f32 -1.442695, %v3288_v53  ;;  %v1141_v37 = vadd.f32 %v2600_v34, %v3168_v40  ;;  %v1029_v25 = vpop.f32.mrf.mxu0 }
 0x147   : > { %2716 = vrcp.f32 %v1687_v57  ;;  %v1690_v8 = vadd.f32 1.0, %v2693_v62  ;;  %v2195_v11 = vmul.f32 -1.442695, %v3291_v59  ;;  %v3297_v28 = vadd.f32 %v3218_v24, %v1494_v58  ;;  %v1387_v16 = vpop.f32.mrf.mxu1 }
 0x148   : > { %v2695_v20 = vpop.eup %2694  ;;  %2718 = vpow2.f32 %v2192_v6  ;;  %v1499_v26 = vadd.f32 %v2642_v2, %v1141_v37  ;;  %v1139_v29 = vadd.f32 %v1029_v25, %v3170_v43  ;;  %v2601_v30 = vpop.f32.mrf.mxu0 }
 0x149   : > { %2720 = vrcp.f32 %v1690_v8  ;;  %v1688_v33 = vadd.f32 1.0, %v2695_v20  ;;  %v2193_v40 = vmul.f32 -1.442695, %v3297_v28  ;;  %v1142_v35 = vadd.f32 %v2601_v30, %v3172_v46  ;;  %v2643_v42 = vpop.f32.mrf.mxu1 }
 0x14a   : > { %v2697_v19 = vpop.eup %2696  ;;  %2722 = vpow2.f32 %v2195_v11  ;;  %v3303_v44 = vadd.f32 %v3218_v24, %v1499_v26  ;;  %v1497_v31 = vadd.f32 %v1387_v16, %v1139_v29  ;;  %v1032_v56 = vpop.f32.mrf.mxu0 }
 0x14b   : > { %v2699_v47 = vpop.eup %2698  ;;  %2724 = vrcp.f32 %v1688_v33  ;;  %v1500_v51 = vadd.f32 %v2643_v42, %v1142_v35  ;;  %v1140_v43 = vadd.f32 %v1032_v56, %v3174_v49  ;;  %v1390_v34 = vpop.f32.mrf.mxu1  ;;  %v1802_v37 = vmul.f32 %v2697_v19, %v3222_v38 }
 0x14c   : > { %v2701_v57 = vpop.eup %2700  ;;  %v1693_v58 = vadd.f32 1.0, %v2699_v47  ;;  %2726 = vpow2.f32 %v2193_v40  ;;  %v2198_v46 = vmul.f32 -1.442695, %v3303_v44  ;;  %v3309_v2 = vadd.f32 %v3218_v24, %v1497_v31  ;;  %v2604_v62 = vpop.f32.mrf.mxu0 }
 0x14d   : > { %v2703_v6 = vpop.eup %2702  ;;  %v3313_v25 = vadd.f32 %v3218_v24, %v1500_v51  ;;  %v1498_v8 = vadd.f32 %v1390_v34, %v1140_v43  ;;  %v1145_v49 = vadd.f32 %v2604_v62, %v3176_v52  ;;  %v2646_v11 = vpop.f32.mrf.mxu1  ;;  %v1800_v20 = vmul.f32 %v2701_v57, %v3227_v48 }
 0x14e   : > { %v2705_v16 = vpop.eup %2704  ;;  %2728 = vrcp.f32 %v1693_v58  ;;  %v1691_v26 = vadd.f32 1.0, %v2703_v6  ;;  %v2196_v29 = vmul.f32 -1.442695, %v3309_v2  ;;  %v1045_v30 = vpop.f32.mrf.mxu0 }
 0x14f   : > { %v2707_v33 = vpop.eup %2706  ;;  %v1803_v40 = vmul.f32 %v2705_v16, %v3232_v63  ;;  %2730 = vpow2.f32 %v2198_v46  ;;  %v2199_v38 = vmul.f32 -1.442695, %v3313_v25  ;;  %v3321_v35 = vadd.f32 %v3218_v24, %v1498_v8  ;;  %v1403_v42 = vpop.f32.mrf.mxu1 }
 0x150   : > { %v2709_v52 = vpop.eup %2708  ;;  %2732 = vrcp.f32 %v1691_v26  ;;  %v1694_v48 = vadd.f32 1.0, %v2707_v33  ;;  %v1503_v19 = vadd.f32 %v2646_v11, %v1145_v49  ;;  %v1143_v31 = vadd.f32 %v1045_v30, %v3178_v55  ;;  %v2605_v63 = vpop.f32.mrf.mxu0 }
 0x151   : > { %v2711_v56 = vpop.eup %2710  ;;  %v2307_v47 = vpack.c.bf16 %v1803_v40, %v1802_v37  ;;  %v1801_v51 = vmul.f32 %v2709_v52, %v3237_v12  ;;  %2734 = vpow2.f32 %v2196_v29  ;;  %v2197_v43 = vmul.f32 -1.442695, %v3321_v35  ;;  %v2647_v34 = vpop.f32.mrf.mxu1 }
 0x152   : > { %v2713_v57 = vpop.eup %2712  ;;  %2736 = vrcp.f32 %v1694_v48  ;;  %v1692_v58 = vadd.f32 1.0, %v2711_v56  ;;  %v3332_v46 = vadd.f32 %v3218_v24, %v1503_v19  ;;  %v1501_v62 = vadd.f32 %v1403_v42, %v1143_v31  ;;  %v1048_v6 = vpop.f32.mrf.mxu0 }
 0x153   : > { %v2715_v8 = vpop.eup %2714  ;;  %2394 = vst [vmem:[%s3326_s4 + $0x8] sm:$0xff] %v2307_v47   ;;  %v2302_v55 = vpack.c.bf16 %v1801_v51, %v1800_v20  ;;  %v1697_v49 = vadd.f32 1.0, %v2713_v57  ;;  %2738 = vpow2.f32 %v2199_v38  ;;  %v1146_v12 = vadd.f32 %v2605_v63, %v3180_v60  ;;  %v1406_v37 = vpop.f32.mrf.mxu1 }
 0x154   : > { %v2717_v11 = vpop.eup %2716  ;;  %v1806_v16 = vmul.f32 %v2715_v8, %v3243_v4  ;;  %2740 = vrcp.f32 %v1692_v58  ;;  %v2202_v26 = vmul.f32 -1.442695, %v3332_v46  ;;  %v3339_v29 = vadd.f32 %v3218_v24, %v1501_v62  ;;  %v2608_v30 = vpop.f32.mrf.mxu0 }
 0x155   : > { %v2719_v33 = vpop.eup %2718  ;;  %2303 = vst [vmem:[%s3326_s4] sm:$0xff] %v2302_v55   ;;  %v1804_v40 = vmul.f32 %v2717_v11, %v3246_v39  ;;  %2742 = vrcp.f32 %v1697_v49  ;;  %v1504_v20 = vadd.f32 %v2647_v34, %v1146_v12  ;;  %v1144_v38 = vadd.f32 %v1048_v6, %v3182_v0  ;;  %v2650_v60 = vpop.f32.mrf.mxu1 }
 0x156   : > { %v2721_v42 = vpop.eup %2720  ;;  %v1695_v52 = vadd.f32 1.0, %v2719_v33  ;;  %2744 = vpow2.f32 %v2197_v43  ;;  %v2200_v4 = vmul.f32 -1.442695, %v3339_v29  ;;  %v1149_v48 = vadd.f32 %v2608_v30, %v3184_v5  ;;  %v1061_v19 = vpop.f32.mrf.mxu0 }
 0x157   : > { %v2723_v31 = vpop.eup %2722  ;;  %v1807_v63 = vmul.f32 %v2721_v42, %v3252_v10  ;;  %2746 = vpow2.f32 %v2202_v26  ;;  %v3348_v56 = vadd.f32 %v3218_v24, %v1504_v20  ;;  %v1502_v39 = vadd.f32 %v1406_v37, %v1144_v38  ;;  %v1419_v47 = vpop.f32.mrf.mxu1 }
 0x158   : > { %v2725_v51 = vpop.eup %2724  ;;  %2748 = vrcp.f32 %v1695_v52  ;;  %v1698_v0 = vadd.f32 1.0, %v2723_v31  ;;  %v1507_v34 = vadd.f32 %v2650_v60, %v1149_v48  ;;  %v1147_v43 = vadd.f32 %v1061_v19, %v3186_v9  ;;  %v2609_v57 = vpop.f32.mrf.mxu0 }
 0x159   : > { %v2727_v58 = vpop.eup %2726  ;;  %v2317_v5 = vpack.c.bf16 %v1807_v63, %v1806_v16  ;;  %v1805_v62 = vmul.f32 %v2725_v51, %v3257_v13  ;;  %2750 = vpow2.f32 %v2200_v4  ;;  %v2203_v10 = vmul.f32 -1.442695, %v3348_v56  ;;  %v2651_v6 = vpop.f32.mrf.mxu1 }
 0x15a   : > { %2752 = vrcp.f32 %v1698_v0  ;;  %v1696_v8 = vadd.f32 1.0, %v2727_v58  ;;  %v3354_v55 = vadd.f32 %v3218_v24, %v1502_v39  ;;  %v3357_v49 = vadd.f32 %v3218_v24, %v1507_v34  ;;  %v1064_v12 = vpop.f32.mrf.mxu0 }
 0x15b   : > { %v2729_v9 = vpop.eup %2728  ;;  %2396 = vst [vmem:[%s3326_s4 + $0x18] sm:$0xff] %v2317_v5   ;;  %v2312_v37 = vpack.c.bf16 %v1805_v62, %v1804_v40  ;;  %2754 = vpow2.f32 %v2203_v10  ;;  %v1505_v11 = vadd.f32 %v1419_v47, %v1147_v43  ;;  %v1150_v13 = vadd.f32 %v2609_v57, %v3188_v14  ;;  %v1422_v16 = vpop.f32.mrf.mxu1 }
 0x15c   : > { %v2731_v26 = vpop.eup %2730  ;;  %2756 = vrcp.f32 %v1696_v8  ;;  %v2201_v30 = vmul.f32 -1.442695, %v3354_v55  ;;  %v2206_v33 = vmul.f32 -1.442695, %v3357_v49  ;;  %v2612_v20 = vpop.f32.mrf.mxu0  ;;  %v1148_v40 = vadd.f32 %v1064_v12, %v3190_v18 }
 0x15d   : > { %v2733_v38 = vpop.eup %2732  ;;  %2395 = vst [vmem:[%s3326_s4 + $0x10] sm:$0xff] %v2312_v37   ;;  %v1701_v60 = vadd.f32 1.0, %v2731_v26  ;;  %v3365_v42 = vadd.f32 %v3218_v24, %v1505_v11  ;;  %v1508_v52 = vadd.f32 %v2651_v6, %v1150_v13  ;;  %v2654_v4 = vpop.f32.mrf.mxu1  ;;  %v1810_v14 = vmul.f32 %v2729_v9, %v3262_v17 }
 0x15e   : > { %v2735_v48 = vpop.eup %2734  ;;  %v1808_v19 = vmul.f32 %v2733_v38, %v3267_v7  ;;  %2758 = vpow2.f32 %v2201_v30  ;;  %v1153_v31 = vadd.f32 %v2612_v20, %v3192_v23  ;;  %v1077_v63 = vpop.f32.mrf.mxu0  ;;  %v1506_v17 = vadd.f32 %v1422_v16, %v1148_v40 }
 0x15f   : > { %v2737_v39 = vpop.eup %2736  ;;  %2760 = vrcp.f32 %v1701_v60  ;;  %v1699_v47 = vadd.f32 1.0, %v2735_v48  ;;  %v2204_v51 = vmul.f32 -1.442695, %v3365_v42  ;;  %v3373_v0 = vadd.f32 %v3218_v24, %v1508_v52  ;;  %v1435_v34 = vpop.f32.mrf.mxu1 }
 0x160   : > { %v2739_v18 = vpop.eup %2738  ;;  %v1811_v43 = vmul.f32 %v2737_v39, %v3271_v22  ;;  %2762 = vpow2.f32 %v2206_v33  ;;  %v1511_v57 = vadd.f32 %v2654_v4, %v1153_v31  ;;  %v2613_v7 = vpop.f32.mrf.mxu0  ;;  %v1151_v62 = vadd.f32 %v1077_v63, %v3194_v27 }
 0x161   : > { %v2741_v58 = vpop.eup %2740  ;;  %2764 = vrcp.f32 %v1699_v47  ;;  %v1702_v23 = vadd.f32 1.0, %v2739_v18  ;;  %v2207_v5 = vmul.f32 -1.442695, %v3373_v0  ;;  %v2655_v10 = vpop.f32.mrf.mxu1  ;;  %v3380_v22 = vadd.f32 %v3218_v24, %v1506_v17 }
 0x162   : > { %v2743_v6 = vpop.eup %2742  ;;  %v2327_v8 = vpack.c.bf16 %v1811_v43, %v1810_v14  ;;  %v1809_v12 = vmul.f32 %v2741_v58, %v3277_v1  ;;  %2766 = vpow2.f32 %v2204_v51  ;;  %v1080_v9 = vpop.f32.mrf.mxu0  ;;  %v3384_v13 = vadd.f32 %v3218_v24, %v1511_v57 }
 0x163   : > { %v2745_v37 = vpop.eup %2744  ;;  %v1814_v11 = vmul.f32 %v2743_v6, %v3281_v21  ;;  %2768 = vrcp.f32 %v1702_v23  ;;  %v1509_v16 = vadd.f32 %v1435_v34, %v1151_v62  ;;  %v1438_v27 = vpop.f32.mrf.mxu1  ;;  %v2205_v1 = vmul.f32 -1.442695, %v3380_v22 }
 0x164   : > { %v2747_v26 = vpop.eup %2746  ;;  %2398 = vst [vmem:[%s3326_s4 + $0x28] sm:$0xff] %v2327_v8   ;;  %v2322_v30 = vpack.c.bf16 %v1809_v12, %v1808_v19  ;;  %v1700_v33 = vadd.f32 1.0, %v2745_v37  ;;  %2770 = vpow2.f32 %v2207_v5  ;;  %v2616_v20 = vpop.f32.mrf.mxu0  ;;  %v2210_v52 = vmul.f32 -1.442695, %v3384_v13 }
 0x165   : > { %v2749_v38 = vpop.eup %2748  ;;  %v1705_v60 = vadd.f32 1.0, %v2747_v26  ;;  %v3390_v21 = vadd.f32 %v3218_v24, %v1509_v16  ;;  %v1154_v40 = vadd.f32 %v2613_v7, %v3196_v32  ;;  %v2658_v4 = vpop.f32.mrf.mxu1  ;;  %v1152_v19 = vadd.f32 %v1080_v9, %v3198_v36 }
 0x166   : > { %v2751_v48 = vpop.eup %2750  ;;  %2397 = vst [vmem:[%s3326_s4 + $0x20] sm:$0xff] %v2322_v30   ;;  %v1812_v14 = vmul.f32 %v2749_v38, %v3288_v53  ;;  %2772 = vrcp.f32 %v1700_v33  ;;  %v1157_v31 = vadd.f32 %v2616_v20, %v3200_v41  ;;  %v1093_v63 = vpop.f32.mrf.mxu0 }
 0x167   : > { %v2753_v39 = vpop.eup %2752  ;;  %2774 = vrcp.f32 %v1705_v60  ;;  %v1703_v47 = vadd.f32 1.0, %v2751_v48  ;;  %v2208_v51 = vmul.f32 -1.442695, %v3390_v21  ;;  %v1512_v34 = vadd.f32 %v2655_v10, %v1154_v40  ;;  %v1451_v18 = vpop.f32.mrf.mxu1 }
 0x168   : > { %v2755_v43 = vpop.eup %2754  ;;  %v1815_v32 = vmul.f32 %v2753_v39, %v3291_v59  ;;  %2776 = vpow2.f32 %v2205_v1  ;;  %v1510_v17 = vadd.f32 %v1438_v27, %v1152_v19  ;;  %v1515_v57 = vadd.f32 %v2658_v4, %v1157_v31  ;;  %v2617_v53 = vpop.f32.mrf.mxu0 }
 0x169   : > { %v2757_v7 = vpop.eup %2756  ;;  %2778 = vrcp.f32 %v1703_v47  ;;  %v1706_v36 = vadd.f32 1.0, %v2755_v43  ;;  %v3400_v41 = vadd.f32 %v3218_v24, %v1512_v34  ;;  %v1155_v58 = vadd.f32 %v1093_v63, %v3202_v45  ;;  %v2659_v23 = vpop.f32.mrf.mxu1 }
 0x16a   : > { %v2337_v5 = vpack.c.bf16 %v1815_v32, %v1814_v11  ;;  %v1813_v62 = vmul.f32 %v2757_v7, %v3297_v28  ;;  %2780 = vpow2.f32 %v2210_v52  ;;  %v3405_v59 = vadd.f32 %v3218_v24, %v1510_v17  ;;  %v1096_v10 = vpop.f32.mrf.mxu0 }
 0x16b   : > { %v2759_v6 = vpop.eup %2758  ;;  %2782 = vrcp.f32 %v1706_v36  ;;  %v2211_v8 = vmul.f32 -1.442695, %v3400_v41  ;;  %v3409_v12 = vadd.f32 %v3218_v24, %v1515_v57  ;;  %v1513_v9 = vadd.f32 %v1451_v18, %v1155_v58  ;;  %v1454_v37 = vpop.f32.mrf.mxu1 }
 0x16c   : > { %v2761_v45 = vpop.eup %2760  ;;  %2400 = vst [vmem:[%s3326_s4 + $0x38] sm:$0xff] %v2337_v5   ;;  %v2332_v11 = vpack.c.bf16 %v1813_v62, %v1812_v14  ;;  %v1704_v16 = vadd.f32 1.0, %v2759_v6  ;;  %2784 = vpow2.f32 %v2208_v51  ;;  %v2209_v28 = vmul.f32 -1.442695, %v3405_v59  ;;  %v2620_v27 = vpop.f32.mrf.mxu0 }
 0x16d   : > { %v2763_v26 = vpop.eup %2762  ;;  %2786 = vpow2.f32 %v2211_v8  ;;  %v2214_v30 = vmul.f32 -1.442695, %v3409_v12  ;;  %v3415_v33 = vadd.f32 %v3218_v24, %v1513_v9  ;;  %v2662_v1 = vpop.f32.mrf.mxu1  ;;  %v1158_v60 = vadd.f32 %v2617_v53, %v3204_v50 }
 0x16e   : > { %v2765_v20 = vpop.eup %2764  ;;  %2399 = vst [vmem:[%s3326_s4 + $0x30] sm:$0xff] %v2332_v11   ;;  %2788 = vrcp.f32 %v1704_v16  ;;  %v1709_v38 = vadd.f32 1.0, %v2763_v26  ;;  %v1156_v52 = vadd.f32 %v1096_v10, %v3206_v54  ;;  %v1109_v40 = vpop.f32.mrf.mxu0  ;;  %v1818_v48 = vmul.f32 %v2761_v45, %v3303_v44 }
 0x16f   : > { %v2767_v4 = vpop.eup %2766  ;;  %2790 = vpow2.f32 %v2209_v28  ;;  %v2212_v14 = vmul.f32 -1.442695, %v3415_v33  ;;  %v1161_v19 = vadd.f32 %v2620_v27, %v3208_v61  ;;  %v1467_v31 = vpop.f32.mrf.mxu1  ;;  %v1816_v39 = vmul.f32 %v2765_v20, %v3309_v2 }
 0x170   : > { %v2769_v63 = vpop.eup %2768  ;;  %v1707_v47 = vadd.f32 1.0, %v2767_v4  ;;  %v1516_v51 = vadd.f32 %v2659_v23, %v1158_v60  ;;  %v1514_v34 = vadd.f32 %v1454_v37, %v1156_v52  ;;  %v2621_v18 = vpop.f32.mrf.mxu0  ;;  %2792 = vpow2.f32 %v2214_v30 }
 0x171   : > { %v2771_v50 = vpop.eup %2770  ;;  %v1819_v54 = vmul.f32 %v2769_v63, %v3313_v25  ;;  %v1519_v43 = vadd.f32 %v2662_v1, %v1161_v19  ;;  %v1159_v44 = vadd.f32 %v1109_v40, %v3210_v3  ;;  %v2663_v32 = vpop.f32.mrf.mxu1  ;;  %2794 = vrcp.f32 %v1709_v38 }
 0x172   : > { %v1710_v17 = vadd.f32 1.0, %v2771_v50  ;;  %v3427_v61 = vadd.f32 %v3218_v24, %v1516_v51  ;;  %v3430_v2 = vadd.f32 %v3218_v24, %v1514_v34  ;;  %v1112_v57 = vpop.f32.mrf.mxu0  ;;  %2796 = vpow2.f32 %v2212_v14 }
 0x173   : > { %v2773_v53 = vpop.eup %2772  ;;  %v2347_v7 = vpack.c.bf16 %v1819_v54, %v1818_v48  ;;  %v3433_v25 = vadd.f32 %v3218_v24, %v1519_v43  ;;  %v1517_v36 = vadd.f32 %v1467_v31, %v1159_v44  ;;  %v1160_v8 = vadd.f32 %v1112_v57, %v3212_v15 }
 0x174   : > { %v2775_v58 = vpop.eup %2774  ;;  %v1817_v3 = vmul.f32 %v2773_v53, %v3321_v35  ;;  %2798 = vrcp.f32 %v1710_v17  ;;  %v2215_v23 = vmul.f32 -1.442695, %v3427_v61  ;;  %v2213_v5 = vmul.f32 -1.442695, %v3430_v2  ;;  %v1470_v35 = vpop.f32.mrf.mxu1 }
 0x175   : > { %v2777_v62 = vpop.eup %2776  ;;  %2402 = vst [vmem:[%s3326_s4 + $0x48] sm:$0xff] %v2347_v7   ;;  %2800 = vrcp.f32 %v1707_v47  ;;  %v2218_v10 = vmul.f32 -1.442695, %v3433_v25  ;;  %v3441_v6 = vadd.f32 %v3218_v24, %v1517_v36  ;;  %v1518_v28 = vadd.f32 %v1470_v35, %v1160_v8 }
 0x176   : > { %v2779_v9 = vpop.eup %2778  ;;  %v2342_v37 = vpack.c.bf16 %v1817_v3, %v1816_v39  ;;  %v1708_v45 = vadd.f32 1.0, %v2777_v62  ;;  %2802 = vpow2.f32 %v2215_v23  ;;  %v1822_v1 = vmul.f32 %v2775_v58, %v3332_v46 }
 0x177   : > { %v2781_v11 = vpop.eup %2780  ;;  %2804 = vpow2.f32 %v2213_v5  ;;  %v2216_v16 = vmul.f32 -1.442695, %v3441_v6  ;;  %v3449_v20 = vadd.f32 %v3218_v24, %v1518_v28  ;;  %v1820_v46 = vmul.f32 %v2779_v9, %v3339_v29 }
 0x178   : > { %v2783_v27 = vpop.eup %2782  ;;  %2401 = vst [vmem:[%s3326_s4 + $0x40] sm:$0xff] %v2342_v37   ;;  %2806 = vrcp.f32 %v1708_v45  ;;  %v1713_v26 = vadd.f32 1.0, %v2781_v11 }
 0x179   : > { %v2785_v30 = vpop.eup %2784  ;;  %v1823_v15 = vmul.f32 %v2783_v27, %v3348_v56  ;;  %2808 = vpow2.f32 %v2218_v10  ;;  %v2217_v48 = vmul.f32 -1.442695, %v3449_v20 }
 0x17a   : > { %v2787_v38 = vpop.eup %2786  ;;  %2810 = vrcp.f32 %v1713_v26  ;;  %v1711_v60 = vadd.f32 1.0, %v2785_v30 }
 0x17b   : > { %v2789_v52 = vpop.eup %2788  ;;  %v2357_v40 = vpack.c.bf16 %v1823_v15, %v1822_v1  ;;  %v1714_v4 = vadd.f32 1.0, %v2787_v38  ;;  %2812 = vpow2.f32 %v2216_v16 }
 0x17c   : > { %v2791_v14 = vpop.eup %2790  ;;  %v1821_v19 = vmul.f32 %v2789_v52, %v3354_v55  ;;  %2814 = vrcp.f32 %v1711_v60 }
 0x17d   : > { %2404 = vst [vmem:[%s3326_s4 + $0x58] sm:$0xff] %v2357_v40   ;;  %2816 = vrcp.f32 %v1714_v4  ;;  %v1712_v24 = vadd.f32 1.0, %v2791_v14  ;;  %v2793_v56 = vpop.eup %2792 }
 0x17e   : > { %v2352_v31 = vpack.c.bf16 %v1821_v19, %v1820_v46  ;;  %2818 = vpow2.f32 %v2217_v48  ;;  %v2795_v63 = vpop.eup %2794  ;;  %v1717_v47 = vadd.f32 1.0, %v2793_v56 }
 0x17f   : > { %2820 = vrcp.f32 %v1712_v24  ;;  %v2797_v39 = vpop.eup %2796  ;;  %v1826_v29 = vmul.f32 %v2795_v63, %v3357_v49 }
 0x180   : > { %2403 = vst [vmem:[%s3326_s4 + $0x50] sm:$0xff] %v2352_v31   ;;  %v1715_v34 = vadd.f32 1.0, %v2797_v39  ;;  %2822 = vrcp.f32 %v1717_v47 }
 0x181   : > { %v2799_v51 = vpop.eup %2798 }
 0x182   : > { %v2801_v18 = vpop.eup %2800  ;;  %v1827_v55 = vmul.f32 %v2799_v51, %v3373_v0  ;;  %2824 = vrcp.f32 %v1715_v34 }
 0x183   : > { %v2803_v50 = vpop.eup %2802  ;;  %v1824_v53 = vmul.f32 %v2801_v18, %v3365_v42 }
 0x184   : > { %v2805_v54 = vpop.eup %2804  ;;  %v2367_v43 = vpack.c.bf16 %v1827_v55, %v1826_v29  ;;  %v1718_v44 = vadd.f32 1.0, %v2803_v50 }
 0x185   : > { %v2807_v32 = vpop.eup %2806  ;;  %v1716_v17 = vadd.f32 1.0, %v2805_v54 }
 0x186   : > { %v2809_v57 = vpop.eup %2808  ;;  %2406 = vst [vmem:[%s3326_s4 + $0x68] sm:$0xff] %v2367_v43   ;;  %v1825_v7 = vmul.f32 %v2807_v32, %v3380_v22  ;;  %2826 = vrcp.f32 %v1718_v44 }
 0x187   : > { %v2811_v36 = vpop.eup %2810  ;;  %2828 = vrcp.f32 %v1716_v17  ;;  %v1721_v49 = vadd.f32 1.0, %v2809_v57 }
 0x188   : > { %v2813_v0 = vpop.eup %2812  ;;  %v2362_v58 = vpack.c.bf16 %v1825_v7, %v1824_v53  ;;  %v1830_v10 = vmul.f32 %v2811_v36, %v3384_v13 }
 0x189   : > { %v2815_v3 = vpop.eup %2814  ;;  %2830 = vrcp.f32 %v1721_v49  ;;  %v1719_v23 = vadd.f32 1.0, %v2813_v0 }
 0x18a   : > { %v2817_v5 = vpop.eup %2816  ;;  %2405 = vst [vmem:[%s3326_s4 + $0x60] sm:$0xff] %v2362_v58   ;;  %v1828_v9 = vmul.f32 %v2815_v3, %v3390_v21 }
 0x18b   : > { %v2819_v62 = vpop.eup %2818  ;;  %v1831_v42 = vmul.f32 %v2817_v5, %v3400_v41  ;;  %2832 = vrcp.f32 %v1719_v23 }
 0x18c   : > { %v2821_v8 = vpop.eup %2820  ;;  %v1720_v22 = vadd.f32 1.0, %v2819_v62 }
 0x18d   : > { %v2377_v37 = vpack.c.bf16 %v1831_v42, %v1830_v10  ;;  %v1829_v45 = vmul.f32 %v2821_v8, %v3405_v59  ;;  %v2823_v11 = vpop.eup %2822 }
 0x18e   : > { %2834 = vrcp.f32 %v1720_v22  ;;  %v1834_v41 = vmul.f32 %v2823_v11, %v3409_v12 }
 0x18f   : > { %2408 = vst [vmem:[%s3326_s4 + $0x78] sm:$0xff] %v2377_v37   ;;  %v2372_v35 = vpack.c.bf16 %v1829_v45, %v1828_v9  ;;  %v2825_v16 = vpop.eup %2824 }
 0x190   : > { %v1832_v21 = vmul.f32 %v2825_v16, %v3415_v33 }
 0x191   : > { %2407 = vst [vmem:[%s3326_s4 + $0x70] sm:$0xff] %v2372_v35  }
 0x193   : > { %v2827_v13 = vpop.eup %2826 }
 0x194   : > { %v2829_v28 = vpop.eup %2828  ;;  %v1835_v27 = vmul.f32 %v2827_v13, %v3427_v61 }
 0x195   : > { %v1833_v59 = vmul.f32 %v2829_v28, %v3430_v2 }
 0x196   : > { %v2831_v26 = vpop.eup %2830  ;;  %v2387_v30 = vpack.c.bf16 %v1835_v27, %v1834_v41 }
 0x197   : > { %v2382_v1 = vpack.c.bf16 %v1833_v59, %v1832_v21  ;;  %v1838_v15 = vmul.f32 %v2831_v26, %v3433_v25 }
 0x198   : > { %2410 = vst [vmem:[%s3326_s4 + $0x88] sm:$0xff] %v2387_v30   ;;  %v2833_v38 = vpop.eup %2832 }
 0x199   : > { %2409 = vst [vmem:[%s3326_s4 + $0x80] sm:$0xff] %v2382_v1   ;;  %v2298_v60 = vpack.c.bf16 %v1838_v15, %v1838_v15  ;;  %v1836_v12 = vmul.f32 %v2833_v38, %v3441_v6 }
 0x19b   : > { %v2835_v52 = vpop.eup %2834  ;;  %2034 = vst [vmem:[%s3326_s4 + $0x98] sm:$0x1] %v2298_v60 }
 0x19c   : > { %v1837_v61 = vmul.f32 %v2835_v52, %v3449_v20 }
 0x19e   : > { %v2392_v40 = vpack.c.bf16 %v1837_v61, %v1836_v12 }
 0x1a0   : > { %2411 = vst [vmem:[%s3326_s4 + $0x90] sm:$0xff] %v2392_v40  }
 0x1a1 PF: > { %s13_s12 = sadd.s32 1, %s2842_s12  }
 0x1a2   : > { %p10_p4 = scmp.ge.s32.totalorder %s13_s12, 4  }
 0x1a4   :  { %12 = sbr.rel (!%p10_p4) target bundleno = 1 (0x1), region = 62 }

</bundles_post_ra>
